<compile_context>
chip_gen: v6e
topology: v6e:2x2x1
jax: 0.10.0
libtpu: 0.0.40
codegen_flags: <defaults>
</compile_context>

<pallas_src>
import jax
import jax.numpy as jnp
from jax.experimental import pallas as pl
from jax.experimental.pallas import tpu as pltpu

HIDDEN_DIM = 256
EMBED_DIM = 128


def gru_decode_kernel(x_ref, h0_ref, wg_ref, bg_ref, wout_ref, bout_ref,
                      probs_ref, hlast_ref, xh_sc):
    """One fused GRU decode step per grid iteration.

    All weight refs have constant index maps -> DMA'd once, resident in VMEM
    across every step.  The hidden state is carried in the resident output
    block `hlast_ref` (same block index for all steps, written back at the end).
    """
    t = pl.program_id(0)
    H = HIDDEN_DIM
    E = EMBED_DIM

    @pl.when(t == 0)
    def _seed_hidden():
        hlast_ref[...] = h0_ref[...]

    h = hlast_ref[...]                                    # (B, H) f32 carry

    # Stage xh = [x_t, h] in bf16 -> single K = E + H MXU pass for all gates.
    xh_sc[:, 0:E] = x_ref[0]                              # (B, E) bf16 embedding
    xh_sc[:, E:E + H] = h.astype(jnp.bfloat16)
    g = jnp.dot(xh_sc[...], wg_ref[...],
                preferred_element_type=jnp.float32) + bg_ref[...]    # (B, 4H) f32

    # PyTorch GRU gate math (gate order r, z, n); columns of g:
    #   [0 :  H)  r pre-activation (x-path + h-path, biases pre-summed)
    #   [H : 2H)  z pre-activation (x-path + h-path, biases pre-summed)
    #   [2H: 3H)  n x-path  (x @ W_in^T + b_in)
    #   [3H: 4H)  n h-path  (h @ W_hn^T + b_hn)
    r = jax.nn.sigmoid(g[:, 0:H])
    z = jax.nn.sigmoid(g[:, H:2 * H])
    n = jnp.tanh(g[:, 2 * H:3 * H] + r * g[:, 3 * H:4 * H])
    h_new = (1.0 - z) * n + z * h                         # (B, H) f32
    hlast_ref[...] = h_new

    # Output projection + numerically-stable softmax over the vocab (lane dim).
    logits = jnp.dot(h_new.astype(jnp.bfloat16), wout_ref[...],
                     preferred_element_type=jnp.float32) + bout_ref[...]
    m = jnp.max(logits, axis=-1, keepdims=True)
    e = jnp.exp(logits - m)
    probs_ref[0] = e * pl.reciprocal(jnp.sum(e, axis=-1, keepdims=True),
                                     approx=True)


def gru_decode_fused(x_all, h0, params):
    """Run T fused GRU decode steps.  x_all: (T, B, E) bf16, h0: (B, H) f32."""
    T, B, E = x_all.shape
    H = HIDDEN_DIM
    V = params["w_out_t"].shape[1]

    cost = pl.CostEstimate(
        flops=int(2 * T * B * ((E + H) * 4 * H + H * V)),
        transcendentals=int(T * B * (3 * H + V)),
        bytes_accessed=int(params["w_gates"].size * 2 + params["w_out_t"].size * 2
                           + params["b_gates"].size * 4 + params["b_out"].size * 4
                           + x_all.size * 2 + T * B * V * 4 + 2 * B * H * 4),
    )

    const2 = lambda t: (0, 0)

    probs_all, h_last = pl.pallas_call(
        gru_decode_kernel,
        grid=(T,),
        in_specs=[
            pl.BlockSpec((1, B, E), lambda t: (t, 0, 0)),   # embedded token, per step
            pl.BlockSpec((B, H), const2),                   # initial hidden (resident)
            pl.BlockSpec((E + H, 4 * H), const2),           # fused gate weight (resident)
            pl.BlockSpec((1, 4 * H), const2),               # fused gate bias (resident)
            pl.BlockSpec((H, V), const2),                   # output weight (resident)
            pl.BlockSpec((1, V), const2),                   # output bias (resident)
        ],
        out_specs=(
            pl.BlockSpec((1, B, V), lambda t: (t, 0, 0)),   # per-step softmax probs
            pl.BlockSpec((B, H), const2),                   # final hidden (carry block)
        ),
        out_shape=(
            jax.ShapeDtypeStruct((T, B, V), jnp.float32),
            jax.ShapeDtypeStruct((B, H), jnp.float32),
        ),
        scratch_shapes=[pltpu.VMEM((B, E + H), jnp.bfloat16)],   # xh staging buffer
        input_output_aliases={1: 1},                        # h0 buffer -> h_last
        compiler_params=pltpu.CompilerParams(
            dimension_semantics=("arbitrary",),             # sequential recurrence over T
            vmem_limit_bytes=32 * 1024 * 1024,
        ),
        cost_estimate=cost,
    )(x_all, h0, params["w_gates"], params["b_gates"],
      params["w_out_t"], params["b_out"])
    return probs_all, h_last


def decoder_forward(word, hidden, params):
    """Module-equivalent single step.  word: (B, 1) int32, hidden: (1, B, 256).
    Returns (softmax probs (B, V), new hidden (1, B, 256))."""
    x = params["embedding"][word[:, 0]]                     # (B, E) bf16 gather (glue)
    probs_all, h_last = gru_decode_fused(x[None], hidden[0], params)
    return probs_all[0], h_last[None]


def decoder_decode(tokens, hidden, params):
    """Fused teacher-forced decode over T steps: weights are DMA'd once and stay
    resident in VMEM for the whole loop.  tokens: (T, B) int32."""
    x_all = params["embedding"][tokens]                     # (T, B, E) bf16
    probs_all, h_last = gru_decode_fused(x_all, hidden[0], params)
    return probs_all, h_last[None]


def init_params(key, vocab_size):
    ks = jax.random.split(key, 7)
    scale = 0.05
    H, E, V = HIDDEN_DIM, EMBED_DIM, vocab_size

    emb = scale * jax.random.normal(ks[0], (V, E), jnp.float32)
    w_ih_t = scale * jax.random.normal(ks[1], (E, 3 * H), jnp.float32)   # W_ih^T
    w_hh_t = scale * jax.random.normal(ks[2], (H, 3 * H), jnp.float32)   # W_hh^T
    b_ih = scale * jax.random.normal(ks[3], (1, 3 * H), jnp.float32)
    b_hh = scale * jax.random.normal(ks[4], (1, 3 * H), jnp.float32)
    w_out_t = scale * jax.random.normal(ks[5], (H, V), jnp.float32)      # W_out^T
    b_out = scale * jax.random.normal(ks[6], (1, V), jnp.float32)

    # bf16 weights for the MXU (halve weight DMA, 2x MXU rate).
    w_ih_q = w_ih_t.astype(jnp.bfloat16)
    w_hh_q = w_hh_t.astype(jnp.bfloat16)

    # Fused, zero-padded gate weight: one K = E + H MXU pass produces
    #   [ r_pre | z_pre | n_x_pre | n_h_pre ]   (H columns each).
    w_gates = jnp.zeros((E + H, 4 * H), jnp.bfloat16)
    w_gates = w_gates.at[:E, 0:2 * H].set(w_ih_q[:, 0:2 * H])
    w_gates = w_gates.at[E:, 0:2 * H].set(w_hh_q[:, 0:2 * H])
    w_gates = w_gates.at[:E, 2 * H:3 * H].set(w_ih_q[:, 2 * H:])
    w_gates = w_gates.at[E:, 3 * H:4 * H].set(w_hh_q[:, 2 * H:])
    b_gates = jnp.concatenate(
        [b_ih[:, :2 * H] + b_hh[:, :2 * H], b_ih[:, 2 * H:], b_hh[:, 2 * H:]],
        axis=-1)                                            # (1, 4H) f32

    return {
        # kernel-side params
        "embedding": emb.astype(jnp.bfloat16),              # (V, E) bf16
        "w_gates": w_gates,                                 # (E+H, 4H) bf16
        "b_gates": b_gates,                                 # (1, 4H) f32
        "w_out_t": w_out_t.astype(jnp.bfloat16),            # (H, V) bf16
        "b_out": b_out,                                     # (1, V) f32
        # unfused bf16 copies for the pure-JAX reference path
        "ref_w_ih_t": w_ih_q, "ref_w_hh_t": w_hh_q,
        "ref_b_ih": b_ih, "ref_b_hh": b_hh,
    }


def reference_forward(word, hidden, params):
    """Pure-JAX reference: standard (unfused) PyTorch GRU equations with the same
    bf16 weights and f32 accumulation.  Also validates the weight fusion."""
    H = HIDDEN_DIM
    x = params["embedding"][word[:, 0]]                     # (B, E) bf16
    h = hidden[0]                                           # (B, H) f32
    gx = jnp.dot(x, params["ref_w_ih_t"],
                 preferred_element_type=jnp.float32) + params["ref_b_ih"]
    gh = jnp.dot(h.astype(jnp.bfloat16), params["ref_w_hh_t"],
                 preferred_element_type=jnp.float32) + params["ref_b_hh"]
    r = jax.nn.sigmoid(gx[:, :H] + gh[:, :H])
    z = jax.nn.sigmoid(gx[:, H:2 * H] + gh[:, H:2 * H])
    n = jnp.tanh(gx[:, 2 * H:] + r * gh[:, 2 * H:])
    h_new = (1.0 - z) * n + z * h
    logits = jnp.dot(h_new.astype(jnp.bfloat16), params["w_out_t"],
                     preferred_element_type=jnp.float32) + params["b_out"]
    return jax.nn.softmax(logits, axis=-1), h_new[None]


if __name__ == "__main__":
    key = jax.random.PRNGKey(0)
    k_params, k_word, k_hidden, k_tokens = jax.random.split(key, 4)

    vocab_size = 512     # multiple of 128 -> lane-dense logits / probs
    batch = 8            # multiple of 8 sublanes (real serving should push toward 128+)

    params = init_params(k_params, vocab_size)
    word = jax.random.randint(k_word, (batch, 1), 0, vocab_size, dtype=jnp.int32)
    hidden = 0.1 * jax.random.normal(k_hidden, (1, batch, HIDDEN_DIM), jnp.float32)

    # --- single step: exact semantics of Decoder.forward ---
    probs, h_out = decoder_forward(word, hidden, params)
    probs = jax.block_until_ready(probs)
    h_out = jax.block_until_ready(h_out)

    ref_probs, ref_h = reference_forward(word, hidden, params)
    assert probs.shape == (batch, vocab_size)
    assert h_out.shape == (1, batch, HIDDEN_DIM)
    assert jnp.allclose(probs, ref_probs, atol=2e-3, rtol=2e-2)
    assert jnp.allclose(h_out, ref_h, atol=2e-3, rtol=2e-2)
    # approx reciprocal -> rows sum to 1 only within ~1e-3
    assert jnp.allclose(jnp.sum(probs, axis=-1), 1.0, atol=3e-3)

    # --- fused multi-step decode: weights stay resident across T steps ---
    T = 4
    tokens = jax.random.randint(k_tokens, (T, batch), 0, vocab_size, dtype=jnp.int32)
    probs_all, h_T = decoder_decode(tokens, hidden, params)
    probs_all = jax.block_until_ready(probs_all)
    h_T = jax.block_until_ready(h_T)

    h_ref = hidden
    for t in range(T):
        p_t, h_ref = reference_forward(tokens[t][:, None], h_ref, params)
        assert jnp.allclose(probs_all[t], p_t, atol=2e-3, rtol=2e-2)
    assert jnp.allclose(h_T, h_ref, atol=2e-3, rtol=2e-2)

    print("KERNEL_OK")
</pallas_src>

<mosaic_0001>
module attributes {stable_mosaic.version = 11 : i64} {
  func.func @gru_decode_kernel(%arg0: i32, %arg1: memref<1x8x128xbf16, #tpu.memory_space<vmem>>, %arg2: memref<8x256xf32, #tpu.memory_space<vmem>>, %arg3: memref<384x1024xbf16, #tpu.memory_space<vmem>>, %arg4: memref<1x1024xf32, #tpu.memory_space<vmem>>, %arg5: memref<256x512xbf16, #tpu.memory_space<vmem>>, %arg6: memref<1x512xf32, #tpu.memory_space<vmem>>, %arg7: memref<1x8x512xf32, #tpu.memory_space<vmem>>, %arg8: memref<8x256xf32, #tpu.memory_space<vmem>>, %arg9: memref<8x384xbf16, #tpu.memory_space<vmem>>) attributes {dimension_semantics = [#tpu.dimension_semantics<arbitrary>], iteration_bounds = array<i64: 1>, scalar_prefetch = 0 : i64, scratch_operands = 1 : i64, tpu.core_type = #tpu.core_type<tc>, window_params = [{transform_indices = @transform_0, window_bounds = array<i64: 1, 8, 128>}, {pipeline_mode = #tpu.pipeline_mode<synchronous>, transform_indices = @transform_1, window_bounds = array<i64: 8, 256>}, {pipeline_mode = #tpu.pipeline_mode<synchronous>, transform_indices = @transform_2, window_bounds = array<i64: 384, 1024>}, {pipeline_mode = #tpu.pipeline_mode<synchronous>, transform_indices = @transform_3, window_bounds = array<i64: 1, 1024>}, {pipeline_mode = #tpu.pipeline_mode<synchronous>, transform_indices = @transform_4, window_bounds = array<i64: 256, 512>}, {pipeline_mode = #tpu.pipeline_mode<synchronous>, transform_indices = @transform_5, window_bounds = array<i64: 1, 512>}, {transform_indices = @transform_6, window_bounds = array<i64: 1, 8, 512>}, {pipeline_mode = #tpu.pipeline_mode<synchronous>, transform_indices = @transform_7, window_bounds = array<i64: 8, 256>}]} {
    %c0_i32 = arith.constant 0 : i32
    %0 = arith.cmpi eq, %arg0, %c0_i32 : i32
    %1 = arith.extui %0 : i1 to i32
    %c0_i32_0 = arith.constant 0 : i32
    %2 = arith.cmpi ne, %1, %c0_i32_0 : i32
    scf.if %2 {
      %c0_29 = arith.constant 0 : index
      %c0_30 = arith.constant 0 : index
      %57 = vector.load %arg2[%c0_29, %c0_30] : memref<8x256xf32, #tpu.memory_space<vmem>>, vector<8x256xf32>
      %c0_31 = arith.constant 0 : index
      %c0_32 = arith.constant 0 : index
      %58 = vector.load %arg8[%c0_31, %c0_32] : memref<8x256xf32, #tpu.memory_space<vmem>>, vector<8x256xf32>
      tpu.vector_store %arg8[%c0_31, %c0_32], %57 {strides = array<i32>} : memref<8x256xf32, #tpu.memory_space<vmem>>, vector<8x256xf32>,
    } else {
    }
    %c0 = arith.constant 0 : index
    %c0_1 = arith.constant 0 : index
    %3 = vector.load %arg8[%c0, %c0_1] : memref<8x256xf32, #tpu.memory_space<vmem>>, vector<8x256xf32>
    %c0_2 = arith.constant 0 : index
    %c0_3 = arith.constant 0 : index
    %c0_4 = arith.constant 0 : index
    %4 = vector.load %arg1[%c0_2, %c0_3, %c0_4] : memref<1x8x128xbf16, #tpu.memory_space<vmem>>, vector<1x8x128xbf16>
    %5 = vector.shape_cast %4 : vector<1x8x128xbf16> to vector<8x128xbf16>
    %c0_5 = arith.constant 0 : index
    %c0_6 = arith.constant 0 : index
    %6 = vector.load %arg9[%c0_5, %c0_6] : memref<8x384xbf16, #tpu.memory_space<vmem>>, vector<8x128xbf16>
    tpu.vector_store %arg9[%c0_5, %c0_6], %5 {strides = array<i32>} : memref<8x384xbf16, #tpu.memory_space<vmem>>, vector<8x128xbf16>,
    %7 = arith.truncf %3 : vector<8x256xf32> to vector<8x256xbf16>
    %c0_7 = arith.constant 0 : index
    %c128 = arith.constant 128 : index
    %8 = vector.load %arg9[%c0_7, %c128] : memref<8x384xbf16, #tpu.memory_space<vmem>>, vector<8x256xbf16>
    tpu.vector_store %arg9[%c0_7, %c128], %7 {strides = array<i32>} : memref<8x384xbf16, #tpu.memory_space<vmem>>, vector<8x256xbf16>,
    %c0_8 = arith.constant 0 : index
    %c0_9 = arith.constant 0 : index
    %9 = vector.load %arg9[%c0_8, %c0_9] : memref<8x384xbf16, #tpu.memory_space<vmem>>, vector<8x384xbf16>
    %c0_10 = arith.constant 0 : index
    %c0_11 = arith.constant 0 : index
    %10 = vector.load %arg3[%c0_10, %c0_11] : memref<384x1024xbf16, #tpu.memory_space<vmem>>, vector<384x1024xbf16>
    %cst = arith.constant dense<0.000000e+00> : vector<8x1024xf32>
    %11 = tpu.matmul %9, %10, %cst {dimension_numbers = #tpu.dot_dimension_numbers<[1], [0], [0], [1], [0, 0, 1, 1], [], []>} : vector<8x384xbf16>, vector<384x1024xbf16>, vector<8x1024xf32> -> vector<8x1024xf32>
    %c0_12 = arith.constant 0 : index
    %c0_13 = arith.constant 0 : index
    %12 = vector.load %arg4[%c0_12, %c0_13] : memref<1x1024xf32, #tpu.memory_space<vmem>>, vector<1x1024xf32>
    %13 = vector.broadcast %12 : vector<1x1024xf32> to vector<8x1024xf32>
    %14 = arith.addf %11, %13 : vector<8x1024xf32>
    %15 = vector.extract_strided_slice %14 {offsets = [0, 0], sizes = [8, 256], strides = [1, 1]} : vector<8x1024xf32> to vector<8x256xf32>
    %16 = arith.negf %15 : vector<8x256xf32>
    %17 = math.exp %16 : vector<8x256xf32>
    %cst_14 = arith.constant 1.000000e+00 : f32
    %18 = vector.broadcast %cst_14 : f32 to vector<8x256xf32>
    %19 = arith.addf %18, %17 : vector<8x256xf32>
    %20 = arith.divf %18, %19 : vector<8x256xf32>
    %21 = vector.extract_strided_slice %14 {offsets = [0, 256], sizes = [8, 256], strides = [1, 1]} : vector<8x1024xf32> to vector<8x256xf32>
    %22 = arith.negf %21 : vector<8x256xf32>
    %23 = math.exp %22 : vector<8x256xf32>
    %cst_15 = arith.constant 1.000000e+00 : f32
    %24 = vector.broadcast %cst_15 : f32 to vector<8x256xf32>
    %25 = arith.addf %24, %23 : vector<8x256xf32>
    %26 = arith.divf %24, %25 : vector<8x256xf32>
    %27 = vector.extract_strided_slice %14 {offsets = [0, 512], sizes = [8, 256], strides = [1, 1]} : vector<8x1024xf32> to vector<8x256xf32>
    %28 = vector.extract_strided_slice %14 {offsets = [0, 768], sizes = [8, 256], strides = [1, 1]} : vector<8x1024xf32> to vector<8x256xf32>
    %29 = arith.mulf %20, %28 : vector<8x256xf32>
    %30 = arith.addf %27, %29 : vector<8x256xf32>
    %31 = math.tanh %30 : vector<8x256xf32>
    %cst_16 = arith.constant 1.000000e+00 : f32
    %32 = vector.broadcast %cst_16 : f32 to vector<8x256xf32>
    %33 = arith.subf %32, %26 : vector<8x256xf32>
    %34 = arith.mulf %33, %31 : vector<8x256xf32>
    %35 = arith.mulf %26, %3 : vector<8x256xf32>
    %36 = arith.addf %34, %35 : vector<8x256xf32>
    %c0_17 = arith.constant 0 : index
    %c0_18 = arith.constant 0 : index
    %37 = vector.load %arg8[%c0_17, %c0_18] : memref<8x256xf32, #tpu.memory_space<vmem>>, vector<8x256xf32>
    tpu.vector_store %arg8[%c0_17, %c0_18], %36 {strides = array<i32>} : memref<8x256xf32, #tpu.memory_space<vmem>>, vector<8x256xf32>,
    %38 = arith.truncf %36 : vector<8x256xf32> to vector<8x256xbf16>
    %c0_19 = arith.constant 0 : index
    %c0_20 = arith.constant 0 : index
    %39 = vector.load %arg5[%c0_19, %c0_20] : memref<256x512xbf16, #tpu.memory_space<vmem>>, vector<256x512xbf16>
    %cst_21 = arith.constant dense<0.000000e+00> : vector<8x512xf32>
    %40 = tpu.matmul %38, %39, %cst_21 {dimension_numbers = #tpu.dot_dimension_numbers<[1], [0], [0], [1], [0, 0, 1, 1], [], []>} : vector<8x256xbf16>, vector<256x512xbf16>, vector<8x512xf32> -> vector<8x512xf32>
    %c0_22 = arith.constant 0 : index
    %c0_23 = arith.constant 0 : index
    %41 = vector.load %arg6[%c0_22, %c0_23] : memref<1x512xf32, #tpu.memory_space<vmem>>, vector<1x512xf32>
    %42 = vector.broadcast %41 : vector<1x512xf32> to vector<8x512xf32>
    %43 = arith.addf %40, %42 : vector<8x512xf32>
    %cst_24 = arith.constant dense<0xFF800000> : vector<8xf32>
    %44 = vector.multi_reduction <maximumf>, %43, %cst_24 [1] : vector<8x512xf32> to vector<8xf32>
    %45 = vector.shape_cast %44 : vector<8xf32> to vector<8x1xf32>
    %46 = vector.broadcast %45 : vector<8x1xf32> to vector<8x512xf32>
    %47 = arith.subf %43, %46 : vector<8x512xf32>
    %48 = math.exp %47 : vector<8x512xf32>
    %cst_25 = arith.constant dense<0.000000e+00> : vector<8xf32>
    %49 = vector.multi_reduction <add>, %48, %cst_25 [1] : vector<8x512xf32> to vector<8xf32>
    %50 = vector.shape_cast %49 : vector<8xf32> to vector<8x1xf32>
    %51 = tpu.reciprocal %50 {approx = true} : vector<8x1xf32> -> vector<8x1xf32>
    %52 = vector.broadcast %51 : vector<8x1xf32> to vector<8x512xf32>
    %53 = arith.mulf %48, %52 : vector<8x512xf32>
    %c0_26 = arith.constant 0 : index
    %c0_27 = arith.constant 0 : index
    %c0_28 = arith.constant 0 : index
    %54 = vector.load %arg7[%c0_26, %c0_27, %c0_28] : memref<1x8x512xf32, #tpu.memory_space<vmem>>, vector<1x8x512xf32>
    %55 = vector.shape_cast %54 : vector<1x8x512xf32> to vector<8x512xf32>
    %56 = vector.shape_cast %53 : vector<8x512xf32> to vector<1x8x512xf32>
    tpu.vector_store %arg7[%c0_26, %c0_27, %c0_28], %56 {strides = array<i32>} : memref<1x8x512xf32, #tpu.memory_space<vmem>>, vector<1x8x512xf32>,
    return
  }
  func.func @transform_0(%arg0: i32) -> (i32, i32, i32) {
    %c0_i32 = arith.constant 0 : i32
    %c0_i32_0 = arith.constant 0 : i32
    %c0_i32_1 = arith.constant 0 : i32
    return %arg0, %c0_i32, %c0_i32_0 : i32, i32, i32
  }
  func.func @transform_1(%arg0: i32) -> (i32, i32) {
    %c0_i32 = arith.constant 0 : i32
    %c0_i32_0 = arith.constant 0 : i32
    %c0_i32_1 = arith.constant 0 : i32
    return %c0_i32, %c0_i32_0 : i32, i32
  }
  func.func @transform_2(%arg0: i32) -> (i32, i32) {
    %c0_i32 = arith.constant 0 : i32
    %c0_i32_0 = arith.constant 0 : i32
    %c0_i32_1 = arith.constant 0 : i32
    return %c0_i32, %c0_i32_0 : i32, i32
  }
  func.func @transform_3(%arg0: i32) -> (i32, i32) {
    %c0_i32 = arith.constant 0 : i32
    %c0_i32_0 = arith.constant 0 : i32
    %c0_i32_1 = arith.constant 0 : i32
    return %c0_i32, %c0_i32_0 : i32, i32
  }
  func.func @transform_4(%arg0: i32) -> (i32, i32) {
    %c0_i32 = arith.constant 0 : i32
    %c0_i32_0 = arith.constant 0 : i32
    %c0_i32_1 = arith.constant 0 : i32
    return %c0_i32, %c0_i32_0 : i32, i32
  }
  func.func @transform_5(%arg0: i32) -> (i32, i32) {
    %c0_i32 = arith.constant 0 : i32
    %c0_i32_0 = arith.constant 0 : i32
    %c0_i32_1 = arith.constant 0 : i32
    return %c0_i32, %c0_i32_0 : i32, i32
  }
  func.func @transform_6(%arg0: i32) -> (i32, i32, i32) {
    %c0_i32 = arith.constant 0 : i32
    %c0_i32_0 = arith.constant 0 : i32
    %c0_i32_1 = arith.constant 0 : i32
    return %arg0, %c0_i32, %c0_i32_0 : i32, i32, i32
  }
  func.func @transform_7(%arg0: i32) -> (i32, i32) {
    %c0_i32 = arith.constant 0 : i32
    %c0_i32_0 = arith.constant 0 : i32
    %c0_i32_1 = arith.constant 0 : i32
    return %c0_i32, %c0_i32_0 : i32, i32
  }
}

</mosaic_0001>

<bundles_post_ra>
// kernel: tpu_custom_call.1
= control target key start
LH: loop header
LB: loop body
LE: loop exit
PB: predicated region body
PF: predicated region fallthrough
CT: control target
= control target key end

     0   :  { %13 = vsyncpa [#allocation4], 0  ;;  %s2878_s0 = inlined_call_operand.vmem [shape: bf16[1,8,128], index: 0, kind: input, shape index: {}]   ;;  %s2879_s1 = inlined_call_operand.hbm [shape: f32[8,256], index: 1, kind: input, shape index: {}, may-alias: {1,7}]   ;;  %s2880_s2 = inlined_call_operand.hbm [shape: bf16[384,1024], index: 2, kind: input, shape index: {}]   ;;  %s2881_s3 = inlined_call_operand.vmem [shape: f32[1,1024], index: 3, kind: input, shape index: {}]   ;;  %s2882_s4 = inlined_call_operand.hbm [shape: bf16[256,512], index: 4, kind: input, shape index: {}]   ;;  %s2883_s5 = inlined_call_operand.vmem [shape: f32[1,512], index: 5, kind: input, shape index: {}]   ;;  %s2884_s6 = inlined_call_operand.hbm [shape: f32[1,8,512], index: 6, kind: output, shape index: {0}]   ;;  %s2885_s7 = inlined_call_operand.hbm [shape: f32[8,256], index: 7, kind: output, shape index: {1}, may-alias: {1,7}]  }
   0x1   :  { %14 = vsyncpa [#allocation7], 0 }
   0x2   :  { %15 = vsyncpa [#allocation5], 0 }
   0x3   :  { %16 = vsyncpa [#allocation11], 0  ;;  %s2729_s24 = smov [#allocation6]  }
   0x4   :  { %s34_s25 = sshll.u32 %s2729_s24, 4  ;;  %s35_s25 = int_to_ptr.vmem [resolvable:$true] %s34_s25 }
   0x5   :  { %s2629_s26 = scalar_lea.vmem %s35_s25, 24576  ;;  %p2634_p1 = scmp.lt.s32.totalorder %s35_s25, %s35_s25 }
   0x6   :  { %p2630_p0 = scmp.ne.s32.totalorder %s35_s25, %s2629_s26  ;;  %p2635_p2 = scmp.lt.s32.totalorder %s2629_s26, %s2629_s26 }
   0x8   :  { %p2636_p3 = por %p2635_p2, %p2634_p1 }
   0xa   :  { %p2637_p4 = pnand %p2636_p3, %p2630_p0 }
   0xc   :  { %2640 = shalt.err (!%p2637_p4)
}
   0xd   :  { %s2730_s27 = smov 512   ;;  %s2731_s28 = smov 32  }
   0xe   :  { %40 = dma.hbm_to_vmem [thread:$0]  %s2880_s2, 24576, %s35_s25, [#allocation7], %s2730_s27, %s2730_s27, %s2731_s28  }
   0xf   :  { %s2732_s8 = smov [#allocation3]   ;;  %s2733_s10 = smov [#allocation8]  }
  0x10   :  { %s25_s9 = sshll.u32 %s2732_s8, 4  ;;  %s48_s11 = sshll.u32 %s2733_s10, 4  ;;  %s26_s9 = int_to_ptr.vmem [resolvable:$true] %s25_s9  ;;  %s49_s11 = int_to_ptr.vmem [resolvable:$true] %s48_s11 }
  0x11   :  { %s2649_s12 = scalar_lea.vmem %s26_s9, 256  ;;  %p2654_p6 = scmp.lt.s32.totalorder %s26_s9, %s26_s9 }
  0x12   :  { %p2650_p5 = scmp.ne.s32.totalorder %s26_s9, %s2649_s12  ;;  %p2655_p7 = scmp.lt.s32.totalorder %s2649_s12, %s2649_s12 }
  0x14   :  { %p2656_p8 = por %p2655_p7, %p2654_p6 }
  0x16   :  { %p2657_p9 = pnand %p2656_p8, %p2650_p5 }
  0x18   :  { %2660 = shalt.err (!%p2657_p9)
}
  0x19   :  { %28 = dma.hbm_to_vmem [thread:$0]  %s2879_s1, 256, %s26_s9, [#allocation4]  }
  0x1a   :  { %s2669_s15 = scalar_lea.vmem %s49_s11, 8192  ;;  %p2674_p11 = scmp.lt.s32.totalorder %s49_s11, %s49_s11 }
  0x1b   :  { %p2670_p10 = scmp.ne.s32.totalorder %s49_s11, %s2669_s15  ;;  %p2675_p12 = scmp.lt.s32.totalorder %s2669_s15, %s2669_s15 }
  0x1d   :  { %p2676_p13 = por %p2675_p12, %p2674_p11 }
  0x1f   :  { %p2677_p0 = pnand %p2676_p13, %p2670_p10 }
  0x21   :  { %2680 = shalt.err (!%p2677_p0)
}
  0x22   :  { %s2734_s2 = smov 256   ;;  %s2735_s16 = smov 16  }
  0x23   :  { %54 = dma.hbm_to_vmem [thread:$0]  %s2882_s4, 8192, %s49_s11, [#allocation7], %s2734_s2, %s2734_s2, %s2735_s16  }
  0x24   :  { %2721 = dma.done.wait [#allocation4], 256  }
  0x25   :  { %2722 = vsyncadd [#allocation4], 4294967040 }
  0x26   :  { %2723 = dma.done.wait [#allocation7], 32768  }
  0x27   :  { %2724 = vsyncadd [#allocation7], 4294934528  ;;  %v2736_v0 = vmov 0   ;;  %v146_v1 = vld [vmem:[#allocation6 + $0x1c0] sm:$0xff]  ;;  %v71_v35 = vld [vmem:[#allocation3] sm:$0xff] }
  0x28   :  { %1368 = vmatprep.mubr.bf16.mxu1 %v2736_v0  ;;  %v150_v2 = vld [vmem:[#allocation6 + $0x1e0] sm:$0xff]  ;;  %v72_v36 = vld [vmem:[#allocation3 + $0x8] sm:$0xff] }
  0x29   :  { %v274_v3 = vld [vmem:[#allocation6 + $0x5c0] sm:$0xff]  ;;  %v2275_v4 = vcombine.high %v146_v1, %v150_v2  ;;  %v2274_v6 = vcombine.low %v146_v1, %v150_v2  ;;  %v2478_v38 = vpack.c.bf16 %v72_v36, %v71_v35 }
  0x2a   :  { %v278_v5 = vld [vmem:[#allocation6 + $0x5e0] sm:$0xff] }
  0x2b   :  { %v138_v7 = vld [vmem:[#allocation6 + $0x180] sm:$0xff]  ;;  %v2403_v9 = vcombine.high %v274_v3, %v278_v5  ;;  %v2402_v10 = vcombine.low %v274_v3, %v278_v5  ;;  %1295 = vmatprep.subr.bf16.mxu0 %v2275_v4  ;;  %87 = vst [vmem:[#allocation2 + $0x4] sm:$0xff] %v2478_v38 }
  0x2c   :  { %v142_v8 = vld [vmem:[#allocation6 + $0x1a0] sm:$0xff]  ;;  %1296 = vmatpush1.bf16.msra.mxu0 %v2274_v6  ;;  %v147_v6 = vld [vmem:[#allocation6 + $0x1c8] sm:$0xff] }
  0x2d   :  { %v2267_v11 = vcombine.high %v138_v7, %v142_v8  ;;  %v266_v12 = vld [vmem:[#allocation6 + $0x580] sm:$0xff]  ;;  %1336 = vmatprep.subr.bf16.mxu1 %v2403_v9  ;;  %v2266_v19 = vcombine.low %v138_v7, %v142_v8  ;;  %v151_v7 = vld [vmem:[#allocation6 + $0x1e8] sm:$0xff] }
  0x2e   :  { %v270_v13 = vld [vmem:[#allocation6 + $0x5a0] sm:$0xff]  ;;  %1337 = vmatpush1.bf16.msra.mxu1 %v2402_v10 }
  0x2f   :  { %v130_v14 = vld [vmem:[#allocation6 + $0x140] sm:$0xff]  ;;  %v2395_v15 = vcombine.high %v266_v12, %v270_v13  ;;  %1297 = vmatprep.subr.bf16.mxu0 %v2267_v11  ;;  %v2394_v20 = vcombine.low %v266_v12, %v270_v13  ;;  %v2277_v11 = vcombine.high %v147_v6, %v151_v7 }
  0x30   :  { %v134_v16 = vld [vmem:[#allocation6 + $0x160] sm:$0xff]  ;;  %1298 = vmatpush1.bf16.msra.mxu0 %v2266_v19 }
  0x31   :  { %v258_v17 = vld [vmem:[#allocation6 + $0x540] sm:$0xff]  ;;  %v2259_v21 = vcombine.high %v130_v14, %v134_v16  ;;  %1338 = vmatprep.subr.bf16.mxu1 %v2395_v15  ;;  %v2258_v27 = vcombine.low %v130_v14, %v134_v16  ;;  %v139_v15 = vld [vmem:[#allocation6 + $0x188] sm:$0xff] }
  0x32   :  { %v262_v18 = vld [vmem:[#allocation6 + $0x560] sm:$0xff]  ;;  %1339 = vmatpush1.bf16.msra.mxu1 %v2394_v20  ;;  %v143_v16 = vld [vmem:[#allocation6 + $0x1a8] sm:$0xff]  ;;  %v2276_v20 = vcombine.low %v147_v6, %v151_v7 }
  0x33   :  { %v2387_v22 = vcombine.high %v258_v17, %v262_v18  ;;  %v122_v23 = vld [vmem:[#allocation6 + $0x100] sm:$0xff]  ;;  %1299 = vmatprep.subr.bf16.mxu0 %v2259_v21  ;;  %v2386_v28 = vcombine.low %v258_v17, %v262_v18  ;;  %v2798_v18 = vld [vmem:[#allocation2 + $0x8] ss:$0 sps:$4 sm:$0xff]  }
  0x34   :  { %v126_v24 = vld [vmem:[#allocation6 + $0x120] sm:$0xff]  ;;  %1300 = vmatpush1.bf16.msra.mxu0 %v2258_v27 }
  0x35   :  { %v250_v25 = vld [vmem:[#allocation6 + $0x500] sm:$0xff]  ;;  %v2251_v29 = vcombine.high %v122_v23, %v126_v24  ;;  %1340 = vmatprep.subr.bf16.mxu1 %v2387_v22  ;;  %v2250_v37 = vcombine.low %v122_v23, %v126_v24  ;;  %v2269_v22 = vcombine.high %v139_v15, %v143_v16 }
  0x36   :  { %v254_v26 = vld [vmem:[#allocation6 + $0x520] sm:$0xff]  ;;  %1341 = vmatpush1.bf16.msra.mxu1 %v2386_v28  ;;  %v2268_v28 = vcombine.low %v139_v15, %v143_v16 }
  0x37   :  { %v2379_v30 = vcombine.high %v250_v25, %v254_v26  ;;  %v114_v31 = vld [vmem:[#allocation6 + $0xc0] sm:$0xff]  ;;  %1301 = vmatprep.subr.bf16.mxu0 %v2251_v29  ;;  %v2378_v39 = vcombine.low %v250_v25, %v254_v26  ;;  %v131_v25 = vld [vmem:[#allocation6 + $0x148] sm:$0xff] }
  0x38   :  { %v118_v32 = vld [vmem:[#allocation6 + $0xe0] sm:$0xff]  ;;  %1302 = vmatpush1.bf16.msra.mxu0 %v2250_v37  ;;  %v135_v26 = vld [vmem:[#allocation6 + $0x168] sm:$0xff] }
  0x39   :  { %v242_v33 = vld [vmem:[#allocation6 + $0x4c0] sm:$0xff]  ;;  %v2243_v40 = vcombine.high %v114_v31, %v118_v32  ;;  %1342 = vmatprep.subr.bf16.mxu1 %v2379_v30  ;;  %v2242_v46 = vcombine.low %v114_v31, %v118_v32  ;;  %v2261_v30 = vcombine.high %v131_v25, %v135_v26  ;;  %v2260_v36 = vcombine.low %v131_v25, %v135_v26 }
  0x3a   :  { %v246_v34 = vld [vmem:[#allocation6 + $0x4e0] sm:$0xff]  ;;  %1343 = vmatpush1.bf16.msra.mxu1 %v2378_v39 }
  0x3b   :  { %v2371_v41 = vcombine.high %v242_v33, %v246_v34  ;;  %v106_v42 = vld [vmem:[#allocation6 + $0x80] sm:$0xff]  ;;  %1303 = vmatprep.subr.bf16.mxu0 %v2243_v40  ;;  %v2370_v47 = vcombine.low %v242_v33, %v246_v34  ;;  %v123_v33 = vld [vmem:[#allocation6 + $0x108] sm:$0xff] }
  0x3c   :  { %v110_v43 = vld [vmem:[#allocation6 + $0xa0] sm:$0xff]  ;;  %1304 = vmatpush1.bf16.msra.mxu0 %v2242_v46  ;;  %v127_v34 = vld [vmem:[#allocation6 + $0x128] sm:$0xff] }
  0x3d   :  { %v234_v44 = vld [vmem:[#allocation6 + $0x480] sm:$0xff]  ;;  %v2235_v48 = vcombine.high %v106_v42, %v110_v43  ;;  %1344 = vmatprep.subr.bf16.mxu1 %v2371_v41  ;;  %v2234_v54 = vcombine.low %v106_v42, %v110_v43  ;;  %v2253_v38 = vcombine.high %v123_v33, %v127_v34  ;;  %v115_v41 = vld [vmem:[#allocation6 + $0xc8] sm:$0xff] }
  0x3e   :  { %v238_v45 = vld [vmem:[#allocation6 + $0x4a0] sm:$0xff]  ;;  %1345 = vmatpush1.bf16.msra.mxu1 %v2370_v47  ;;  %v119_v42 = vld [vmem:[#allocation6 + $0xe8] sm:$0xff] }
  0x3f   :  { %v2363_v49 = vcombine.high %v234_v44, %v238_v45  ;;  %v98_v50 = vld [vmem:[#allocation6 + $0x40] sm:$0xff]  ;;  %1305 = vmatprep.subr.bf16.mxu0 %v2235_v48  ;;  %v2362_v55 = vcombine.low %v234_v44, %v238_v45  ;;  %v2252_v44 = vcombine.low %v123_v33, %v127_v34  ;;  %v2245_v46 = vcombine.high %v115_v41, %v119_v42  ;;  %v255_v33 = vld [vmem:[#allocation6 + $0x528] sm:$0xff] }
  0x40   :  { %v102_v51 = vld [vmem:[#allocation6 + $0x60] sm:$0xff]  ;;  %1306 = vmatpush1.bf16.msra.mxu0 %v2234_v54 }
  0x41   :  { %v226_v52 = vld [vmem:[#allocation6 + $0x440] sm:$0xff]  ;;  %v2227_v56 = vcombine.high %v98_v50, %v102_v51  ;;  %1346 = vmatprep.subr.bf16.mxu1 %v2363_v49  ;;  %v2226_v63 = vcombine.low %v98_v50, %v102_v51  ;;  %v107_v49 = vld [vmem:[#allocation6 + $0x88] sm:$0xff] }
  0x42   :  { %v230_v53 = vld [vmem:[#allocation6 + $0x460] sm:$0xff]  ;;  %1347 = vmatpush1.bf16.msra.mxu1 %v2362_v55  ;;  %v111_v50 = vld [vmem:[#allocation6 + $0xa8] sm:$0xff] }
  0x43   :  { %v2355_v57 = vcombine.high %v226_v52, %v230_v53  ;;  %v90_v58 = vld [vmem:[#allocation6] sm:$0xff]  ;;  %1307 = vmatprep.subr.bf16.mxu0 %v2227_v56  ;;  %v2354_v1 = vcombine.low %v226_v52, %v230_v53  ;;  %v2244_v52 = vcombine.low %v115_v41, %v119_v42  ;;  %v2237_v54 = vcombine.high %v107_v49, %v111_v50  ;;  %v247_v41 = vld [vmem:[#allocation6 + $0x4e8] sm:$0xff] }
  0x44   :  { %v94_v59 = vld [vmem:[#allocation6 + $0x20] sm:$0xff]  ;;  %1308 = vmatpush1.bf16.msra.mxu0 %v2226_v63 }
  0x45   :  { %v77_v60 = vld [vmem:[%s2878_s0] sm:$0xf]  ;;  %v2219_v2 = vcombine.high %v90_v58, %v94_v59  ;;  %1348 = vmatprep.subr.bf16.mxu1 %v2355_v57  ;;  %v2218_v8 = vcombine.low %v90_v58, %v94_v59  ;;  %v99_v57 = vld [vmem:[#allocation6 + $0x48] sm:$0xff] }
  0x46   :  { %v218_v61 = vld [vmem:[#allocation6 + $0x400] sm:$0xff]  ;;  %78 = vst [vmem:[#allocation2] sm:$0xf] %v77_v60  ;;  %1349 = vmatpush1.bf16.msra.mxu1 %v2354_v1  ;;  %v103_v58 = vld [vmem:[#allocation6 + $0x68] sm:$0xff]  ;;  %v2236_v60 = vcombine.low %v107_v49, %v111_v50 }
  0x47   :  { %v222_v62 = vld [vmem:[#allocation6 + $0x420] sm:$0xff]  ;;  %1309 = vmatprep.subr.bf16.mxu0 %v2219_v2  ;;  %v91_v2 = vld [vmem:[#allocation6 + $0x8] sm:$0xff] }
  0x48   :  { %v2347_v3 = vcombine.high %v218_v61, %v222_v62  ;;  %v210_v4 = vld [vmem:[#allocation6 + $0x3c0] sm:$0xff]  ;;  %v2346_v9 = vcombine.low %v218_v61, %v222_v62  ;;  %1310 = vmatpush1.bf16.msra.mxu0 %v2218_v8  ;;  %v2229_v62 = vcombine.high %v99_v57, %v103_v58  ;;  %v275_v8 = vld [vmem:[#allocation6 + $0x5c8] sm:$0xff] }
  0x49   :  { %v214_v5 = vld [vmem:[#allocation6 + $0x3e0] sm:$0xff]  ;;  %v239_v49 = vld [vmem:[#allocation6 + $0x4a8] sm:$0xff] }
  0x4a   :  { %v2339_v10 = vcombine.high %v210_v4, %v214_v5  ;;  %1350 = vmatprep.subr.bf16.mxu1 %v2347_v3  ;;  %v202_v12 = vld [vmem:[#allocation6 + $0x380] sm:$0xff]  ;;  %v2338_v19 = vcombine.low %v210_v4, %v214_v5  ;;  %v95_v3 = vld [vmem:[#allocation6 + $0x28] sm:$0xff]  ;;  %v2228_v5 = vcombine.low %v99_v57, %v103_v58 }
  0x4b   :  { %v206_v13 = vld [vmem:[#allocation6 + $0x3a0] sm:$0xff]  ;;  %1351 = vmatpush1.bf16.msra.mxu1 %v2346_v9  ;;  %v2221_v7 = vcombine.high %v91_v2, %v95_v3  ;;  %v279_v9 = vld [vmem:[#allocation6 + $0x5e8] sm:$0xff] }
  0x4c   :  { %1311 = vmatprep.subr.bf16.mxu0 %v2339_v10  ;;  %v2331_v21 = vcombine.high %v202_v12, %v206_v13  ;;  %1377 = vmatprep.subr.bf16.mxu1 %v2277_v11  ;;  %v194_v23 = vld [vmem:[#allocation6 + $0x340] sm:$0xff]  ;;  %v2330_v27 = vcombine.low %v202_v12, %v206_v13  ;;  %v211_v10 = vld [vmem:[#allocation6 + $0x3c8] sm:$0xff]  ;;  %v2220_v13 = vcombine.low %v91_v2, %v95_v3 }
  0x4d   :  { %v2792_v14 = vld [vmem:[#allocation2] sm:$0xff]  ;;  %1312 = vmatpush2.bf16.msra.mxu0 %v2338_v19  ;;  %v2405_v15 = vcombine.high %v275_v8, %v279_v9 }
  0x4e   :  { %v2796_v17 = vcombine.high %v2792_v14, %v2792_v14  ;;  %v198_v24 = vld [vmem:[#allocation6 + $0x360] sm:$0xff]  ;;  %1369 = vmatmul.mubr.bf16.vlgmr.msra.gmra.mxu1 %v2798_v18  ;;  %1313 = vmatprep.subr.bf16.mxu0 %v2331_v21  ;;  %v215_v11 = vld [vmem:[#allocation6 + $0x3e8] sm:$0xff]  ;;  %v2805_v21 = vcombine.low %v2792_v14, %v2792_v14 }
  0x4f   :  { %1378 = vmatpush1.bf16.msra.mxu1 %v2276_v20  ;;  %v2323_v29 = vcombine.high %v194_v23, %v198_v24  ;;  %v186_v31 = vld [vmem:[#allocation6 + $0x300] sm:$0xff]  ;;  %v2322_v35 = vcombine.low %v194_v23, %v198_v24  ;;  %v2341_v16 = vcombine.high %v211_v10, %v215_v11  ;;  %v267_v19 = vld [vmem:[#allocation6 + $0x588] sm:$0xff]  ;;  %v2404_v24 = vcombine.low %v275_v8, %v279_v9 }
  0x50   :  { %1327 = vmatprep.mubr.bf16.mxu0 %v2796_v17  ;;  %1379 = vmatprep.subr.bf16.mxu1 %v2269_v22  ;;  %v190_v32 = vld [vmem:[#allocation6 + $0x320] sm:$0xff]  ;;  %v271_v20 = vld [vmem:[#allocation6 + $0x5a8] sm:$0xff]  ;;  %v2340_v25 = vcombine.low %v211_v10, %v215_v11 }
  0x51   :  { %1409 = vmatprep.mubr.bf16.mxu1 %v2796_v17  ;;  %1314 = vmatpush2.bf16.msra.mxu0 %v2330_v27  ;;  %v2315_v37 = vcombine.high %v186_v31, %v190_v32  ;;  %v178_v39 = vld [vmem:[#allocation6 + $0x2c0] sm:$0xff]  ;;  %v2314_v43 = vcombine.low %v186_v31, %v190_v32  ;;  %v203_v22 = vld [vmem:[#allocation6 + $0x388] sm:$0xff]  ;;  %v2397_v26 = vcombine.high %v267_v19, %v271_v20 }
  0x52   :  { %1315 = vmatprep.subr.bf16.mxu0 %v2323_v29  ;;  %v182_v40 = vld [vmem:[#allocation6 + $0x2e0] sm:$0xff]  ;;  %v207_v23 = vld [vmem:[#allocation6 + $0x3a8] sm:$0xff]  ;;  %v2396_v32 = vcombine.low %v267_v19, %v271_v20 }
  0x53   :  { %1380 = vmatpush1.bf16.msra.mxu1 %v2268_v28  ;;  %v2307_v45 = vcombine.high %v178_v39, %v182_v40  ;;  %v170_v47 = vld [vmem:[#allocation6 + $0x280] sm:$0xff]  ;;  %v2306_v51 = vcombine.low %v178_v39, %v182_v40  ;;  %v195_v27 = vld [vmem:[#allocation6 + $0x348] sm:$0xff]  ;;  %v2333_v31 = vcombine.high %v203_v22, %v207_v23  ;;  %v2332_v34 = vcombine.low %v203_v22, %v207_v23 }
  0x54   :  { %1381 = vmatprep.subr.bf16.mxu1 %v2261_v30  ;;  %v174_v48 = vld [vmem:[#allocation6 + $0x2a0] sm:$0xff]  ;;  %v199_v28 = vld [vmem:[#allocation6 + $0x368] sm:$0xff] }
  0x55   :  { %1316 = vmatpush2.bf16.msra.mxu0 %v2322_v35  ;;  %v2299_v53 = vcombine.high %v170_v47, %v174_v48  ;;  %v162_v55 = vld [vmem:[#allocation6 + $0x240] sm:$0xff]  ;;  %v2298_v59 = vcombine.low %v170_v47, %v174_v48  ;;  %v259_v29 = vld [vmem:[#allocation6 + $0x548] sm:$0xff]  ;;  %v2324_v42 = vcombine.low %v195_v27, %v199_v28 }
  0x56   :  { %1317 = vmatprep.subr.bf16.mxu0 %v2315_v37  ;;  %v166_v56 = vld [vmem:[#allocation6 + $0x260] sm:$0xff]  ;;  %v263_v30 = vld [vmem:[#allocation6 + $0x568] sm:$0xff] }
  0x57   :  { %1382 = vmatpush1.bf16.msra.mxu1 %v2260_v36  ;;  %v2291_v61 = vcombine.high %v162_v55, %v166_v56  ;;  %v154_v63 = vld [vmem:[#allocation6 + $0x200] sm:$0xff]  ;;  %v2290_v4 = vcombine.low %v162_v55, %v166_v56  ;;  %v251_v14 = vld [vmem:[#allocation6 + $0x508] sm:$0xff]  ;;  %v2389_v35 = vcombine.high %v259_v29, %v263_v30  ;;  %v2388_v39 = vcombine.low %v259_v29, %v263_v30 }
  0x58   :  { %1383 = vmatprep.subr.bf16.mxu1 %v2253_v38  ;;  %v158_v1 = vld [vmem:[#allocation6 + $0x220] sm:$0xff]  ;;  %v187_v36 = vld [vmem:[#allocation6 + $0x308] sm:$0xff]  ;;  %v2325_v38 = vcombine.high %v195_v27, %v199_v28  ;;  %v2380_v47 = vcombine.low %v251_v14, %v255_v33  ;;  %v272_v27 = vld [vmem:[#allocation6 + $0x5b0] sm:$0xff] }
  0x59   :  { %1318 = vmatpush2.bf16.msra.mxu0 %v2314_v43  ;;  %v2283_v6 = vcombine.high %v154_v63, %v158_v1  ;;  %v2282_v12 = vcombine.low %v154_v63, %v158_v1  ;;  %v191_v37 = vld [vmem:[#allocation6 + $0x328] sm:$0xff]  ;;  %v2381_v43 = vcombine.high %v251_v14, %v255_v33  ;;  %v136_v14 = vld [vmem:[#allocation6 + $0x170] sm:$0xff] }
  0x5a   :  { %1319 = vmatprep.subr.bf16.mxu0 %v2307_v45  ;;  %v243_v40 = vld [vmem:[#allocation6 + $0x4c8] sm:$0xff]  ;;  %v2316_v50 = vcombine.low %v187_v36, %v191_v37  ;;  %v260_v33 = vld [vmem:[#allocation6 + $0x550] sm:$0xff] }
  0x5b   :  { %1384 = vmatpush1.bf16.msra.mxu1 %v2252_v44  ;;  %v179_v44 = vld [vmem:[#allocation6 + $0x2c8] sm:$0xff]  ;;  %v2372_v55 = vcombine.low %v243_v40, %v247_v41 }
  0x5c   :  { %1385 = vmatprep.subr.bf16.mxu1 %v2245_v46  ;;  %v183_v45 = vld [vmem:[#allocation6 + $0x2e8] sm:$0xff]  ;;  %v2317_v46 = vcombine.high %v187_v36, %v191_v37 }
  0x5d   :  { %1320 = vmatpush2.bf16.msra.mxu0 %v2306_v51  ;;  %v235_v48 = vld [vmem:[#allocation6 + $0x488] sm:$0xff]  ;;  %v2373_v51 = vcombine.high %v243_v40, %v247_v41  ;;  %v2308_v58 = vcombine.low %v179_v44, %v183_v45  ;;  %v128_v40 = vld [vmem:[#allocation6 + $0x130] sm:$0xff] }
  0x5e   :  { %1321 = vmatprep.subr.bf16.mxu0 %v2299_v53  ;;  %v175_v53 = vld [vmem:[#allocation6 + $0x2a8] sm:$0xff]  ;;  %v2364_v63 = vcombine.low %v235_v48, %v239_v49  ;;  %v252_v41 = vld [vmem:[#allocation6 + $0x510] sm:$0xff] }
  0x5f   :  { %1386 = vmatpush1.bf16.msra.mxu1 %v2244_v52  ;;  %v171_v52 = vld [vmem:[#allocation6 + $0x288] sm:$0xff] }
  0x60   :  { %1387 = vmatprep.subr.bf16.mxu1 %v2237_v54  ;;  %v2309_v54 = vcombine.high %v179_v44, %v183_v45  ;;  %v227_v56 = vld [vmem:[#allocation6 + $0x448] sm:$0xff]  ;;  %v2300_v3 = vcombine.low %v171_v52, %v175_v53 }
  0x61   :  { %1322 = vmatpush2.bf16.msra.mxu0 %v2298_v59  ;;  %v231_v57 = vld [vmem:[#allocation6 + $0x468] sm:$0xff]  ;;  %v2365_v59 = vcombine.high %v235_v48, %v239_v49  ;;  %v120_v48 = vld [vmem:[#allocation6 + $0xf0] sm:$0xff] }
  0x62   :  { %1323 = vmatprep.subr.bf16.mxu0 %v2291_v61  ;;  %v167_v61 = vld [vmem:[#allocation6 + $0x268] sm:$0xff]  ;;  %v2356_v8 = vcombine.low %v227_v56, %v231_v57  ;;  %v244_v49 = vld [vmem:[#allocation6 + $0x4d0] sm:$0xff] }
  0x63   :  { %1388 = vmatpush1.bf16.msra.mxu1 %v2236_v60  ;;  %v163_v60 = vld [vmem:[#allocation6 + $0x248] sm:$0xff] }
  0x64   :  { %1389 = vmatprep.subr.bf16.mxu1 %v2229_v62  ;;  %v2301_v62 = vcombine.high %v171_v52, %v175_v53  ;;  %v219_v1 = vld [vmem:[#allocation6 + $0x408] sm:$0xff]  ;;  %v2292_v9 = vcombine.low %v163_v60, %v167_v61 }
  0x65   :  { %1324 = vmatpush2.bf16.msra.mxu0 %v2290_v4  ;;  %v223_v2 = vld [vmem:[#allocation6 + $0x428] sm:$0xff]  ;;  %v2357_v4 = vcombine.high %v227_v56, %v231_v57  ;;  %v112_v56 = vld [vmem:[#allocation6 + $0xb0] sm:$0xff] }
  0x66   :  { %1325 = vmatprep.subr.bf16.mxu0 %v2283_v6  ;;  %v155_v6 = vld [vmem:[#allocation6 + $0x208] sm:$0xff]  ;;  %v2349_v10 = vcombine.high %v219_v1, %v223_v2  ;;  %v2348_v19 = vcombine.low %v219_v1, %v223_v2  ;;  %v236_v57 = vld [vmem:[#allocation6 + $0x490] sm:$0xff] }
  0x67   :  { %1390 = vmatpush1.bf16.msra.mxu1 %v2228_v5  ;;  %v2293_v5 = vcombine.high %v163_v60, %v167_v61  ;;  %v104_v1 = vld [vmem:[#allocation6 + $0x70] sm:$0xff] }
  0x68   :  { %1391 = vmatprep.subr.bf16.mxu1 %v2221_v7  ;;  %v159_v7 = vld [vmem:[#allocation6 + $0x228] sm:$0xff]  ;;  %v228_v2 = vld [vmem:[#allocation6 + $0x450] sm:$0xff] }
  0x69   :  { %1326 = vmatpush2.bf16.msra.mxu0 %v2282_v12  ;;  %v2285_v11 = vcombine.high %v155_v6, %v159_v7  ;;  %v148_v12 = vld [vmem:[#allocation6 + $0x1d0] sm:$0xff]  ;;  %v2284_v20 = vcombine.low %v155_v6, %v159_v7 }
  0x6a   :  { %1418 = vmatprep.subr.bf16.mxu0 %v2405_v15  ;;  %v276_v15 = vld [vmem:[#allocation6 + $0x5d0] sm:$0xff] }
  0x6b   :  { %1392 = vmatpush1.bf16.msra.mxu1 %v2220_v13  ;;  %v152_v13 = vld [vmem:[#allocation6 + $0x1f0] sm:$0xff] }
  0x6c   :  { %1393 = vmatprep.subr.bf16.mxu1 %v2341_v16  ;;  %1328 = vmatmul.mubr.bf16.vlgmr.msra.gmra.mxu0 %v2805_v21  ;;  %v280_v16 = vld [vmem:[#allocation6 + $0x5f0] sm:$0xff]  ;;  %v2279_v22 = vcombine.high %v148_v12, %v152_v13  ;;  %v2278_v28 = vcombine.low %v148_v12, %v152_v13 }
  0x6d   :  { %1419 = vmatpush1.bf16.msra.mxu0 %v2404_v24  ;;  %1450 = vmatprep.mubr.bf16.mxu0 %v2736_v0  ;;  %v2407_v23 = vcombine.high %v276_v15, %v280_v16  ;;  %v140_v24 = vld [vmem:[#allocation6 + $0x190] sm:$0xff]  ;;  %v2406_v29 = vcombine.low %v276_v15, %v280_v16 }
  0x6e   :  { %1420 = vmatprep.subr.bf16.mxu0 %v2397_v26  ;;  %v268_v26 = vld [vmem:[#allocation6 + $0x590] sm:$0xff] }
  0x6f   :  { %1394 = vmatpush2.bf16.msra.mxu1 %v2340_v25  ;;  %v144_v25 = vld [vmem:[#allocation6 + $0x1b0] sm:$0xff]  ;;  %v2398_v36 = vcombine.low %v268_v26, %v272_v27 }
  0x70   :  { %1395 = vmatprep.subr.bf16.mxu1 %v2333_v31  ;;  %v2271_v30 = vcombine.high %v140_v24, %v144_v25  ;;  %v2399_v31 = vcombine.high %v268_v26, %v272_v27 }
  0x71   :  { %1421 = vmatpush1.bf16.msra.mxu0 %v2396_v32  ;;  %v132_v32 = vld [vmem:[#allocation6 + $0x150] sm:$0xff] }
  0x72   :  { %1422 = vmatprep.subr.bf16.mxu0 %v2389_v35  ;;  %v2270_v35 = vcombine.low %v140_v24, %v144_v25  ;;  %v2263_v37 = vcombine.high %v132_v32, %v136_v14 }
  0x73   :  { %1396 = vmatpush2.bf16.msra.mxu1 %v2332_v34  ;;  %v264_v34 = vld [vmem:[#allocation6 + $0x570] sm:$0xff] }
  0x74   :  { %1397 = vmatprep.subr.bf16.mxu1 %v2325_v38  ;;  %v2391_v38 = vcombine.high %v260_v33, %v264_v34  ;;  %v2390_v44 = vcombine.low %v260_v33, %v264_v34 }
  0x75   :  { %1423 = vmatpush1.bf16.msra.mxu0 %v2388_v39  ;;  %v124_v39 = vld [vmem:[#allocation6 + $0x110] sm:$0xff] }
  0x76   :  { %1424 = vmatprep.subr.bf16.mxu0 %v2381_v43  ;;  %v2262_v43 = vcombine.low %v132_v32, %v136_v14  ;;  %v2255_v45 = vcombine.high %v124_v39, %v128_v40 }
  0x77   :  { %1398 = vmatpush2.bf16.msra.mxu1 %v2324_v42  ;;  %v256_v42 = vld [vmem:[#allocation6 + $0x530] sm:$0xff] }
  0x78   :  { %1399 = vmatprep.subr.bf16.mxu1 %v2317_v46  ;;  %v2383_v46 = vcombine.high %v252_v41, %v256_v42  ;;  %v2382_v52 = vcombine.low %v252_v41, %v256_v42 }
  0x79   :  { %1425 = vmatpush1.bf16.msra.mxu0 %v2380_v47  ;;  %v116_v47 = vld [vmem:[#allocation6 + $0xd0] sm:$0xff] }
  0x7a   :  { %1426 = vmatprep.subr.bf16.mxu0 %v2373_v51  ;;  %v2254_v51 = vcombine.low %v124_v39, %v128_v40  ;;  %v2247_v53 = vcombine.high %v116_v47, %v120_v48 }
  0x7b   :  { %1400 = vmatpush2.bf16.msra.mxu1 %v2316_v50  ;;  %v248_v50 = vld [vmem:[#allocation6 + $0x4f0] sm:$0xff] }
  0x7c   :  { %1401 = vmatprep.subr.bf16.mxu1 %v2309_v54  ;;  %v2375_v54 = vcombine.high %v244_v49, %v248_v50  ;;  %v2374_v60 = vcombine.low %v244_v49, %v248_v50  ;;  %v180_v50 = vld [vmem:[#allocation6 + $0x2d0] sm:$0xff] }
  0x7d   :  { %1427 = vmatpush1.bf16.msra.mxu0 %v2372_v55  ;;  %v108_v55 = vld [vmem:[#allocation6 + $0x90] sm:$0xff] }
  0x7e   :  { %1428 = vmatprep.subr.bf16.mxu0 %v2365_v59  ;;  %v2246_v59 = vcombine.low %v116_v47, %v120_v48  ;;  %v2239_v61 = vcombine.high %v108_v55, %v112_v56 }
  0x7f   :  { %1402 = vmatpush2.bf16.msra.mxu1 %v2308_v58  ;;  %v240_v58 = vld [vmem:[#allocation6 + $0x4b0] sm:$0xff] }
  0x80   :  { %1403 = vmatprep.subr.bf16.mxu1 %v2301_v62  ;;  %v2367_v62 = vcombine.high %v236_v57, %v240_v58 }
  0x81   :  { %1429 = vmatpush1.bf16.msra.mxu0 %v2364_v63  ;;  %v100_v63 = vld [vmem:[#allocation6 + $0x50] sm:$0xff] }
  0x82   :  { %1430 = vmatprep.subr.bf16.mxu0 %v2357_v4  ;;  %v2238_v4 = vcombine.low %v108_v55, %v112_v56  ;;  %v2231_v6 = vcombine.high %v100_v63, %v104_v1  ;;  %v2230_v12 = vcombine.low %v100_v63, %v104_v1 }
  0x83   :  { %1404 = vmatpush2.bf16.msra.mxu1 %v2300_v3  ;;  %v232_v3 = vld [vmem:[#allocation6 + $0x470] sm:$0xff] }
  0x84   :  { %1405 = vmatprep.subr.bf16.mxu1 %v2293_v5  ;;  %v2366_v5 = vcombine.low %v236_v57, %v240_v58  ;;  %v2359_v7 = vcombine.high %v228_v2, %v232_v3  ;;  %v2358_v13 = vcombine.low %v228_v2, %v232_v3  ;;  %v172_v57 = vld [vmem:[#allocation6 + $0x290] sm:$0xff] }
  0x85   :  { %1431 = vmatpush1.bf16.msra.mxu0 %v2356_v8  ;;  %v92_v8 = vld [vmem:[#allocation6 + $0x10] sm:$0xff] }
  0x86   :  { %1432 = vmatprep.subr.bf16.mxu0 %v2349_v10  ;;  %v220_v10 = vld [vmem:[#allocation6 + $0x410] sm:$0xff] }
  0x87   :  { %1406 = vmatpush2.bf16.msra.mxu1 %v2292_v9  ;;  %v96_v9 = vld [vmem:[#allocation6 + $0x30] sm:$0xff] }
  0x88   :  { %1407 = vmatprep.subr.bf16.mxu1 %v2285_v11  ;;  %v224_v11 = vld [vmem:[#allocation6 + $0x430] sm:$0xff]  ;;  %v2223_v15 = vcombine.high %v92_v8, %v96_v9  ;;  %v2222_v24 = vcombine.low %v92_v8, %v96_v9 }
  0x89   :  { %1433 = vmatpush1.bf16.msra.mxu0 %v2348_v19  ;;  %v2351_v16 = vcombine.high %v220_v10, %v224_v11  ;;  %v212_v19 = vld [vmem:[#allocation6 + $0x3d0] sm:$0xff]  ;;  %v2350_v25 = vcombine.low %v220_v10, %v224_v11 }
  0x8a   :  { %1459 = vmatprep.subr.bf16.mxu0 %v2279_v22  ;;  %v149_v22 = vld [vmem:[#allocation6 + $0x1d8] sm:$0xff]  ;;  %v176_v58 = vld [vmem:[#allocation6 + $0x2b0] sm:$0xff] }
  0x8b   :  { %1408 = vmatpush2.bf16.msra.mxu1 %v2284_v20  ;;  %v216_v20 = vld [vmem:[#allocation6 + $0x3f0] sm:$0xff]  ;;  %v2303_v63 = vcombine.high %v172_v57, %v176_v58 }
  0x8c   :  { %1500 = vmatprep.subr.bf16.mxu1 %v2407_v23  ;;  %1451 = vmatmul.mubr.bf16.vlgmr.msra.gmra.mxu0 %v2798_v18  ;;  %v153_v23 = vld [vmem:[#allocation6 + $0x1f8] sm:$0xff]  ;;  %v2343_v26 = vcombine.high %v212_v19, %v216_v20  ;;  %v2342_v32 = vcombine.low %v212_v19, %v216_v20  ;;  %v164_v2 = vld [vmem:[#allocation6 + $0x250] sm:$0xff] }
  0x8d   :  { %1460 = vmatpush1.bf16.msra.mxu0 %v2278_v28  ;;  %1491 = vmatprep.mubr.bf16.mxu0 %v2796_v17  ;;  %v2281_v27 = vcombine.high %v149_v22, %v153_v23  ;;  %v204_v28 = vld [vmem:[#allocation6 + $0x390] sm:$0xff]  ;;  %v2280_v14 = vcombine.low %v149_v22, %v153_v23  ;;  %v277_v22 = vld [vmem:[#allocation6 + $0x5d8] sm:$0xff] }
  0x8e   :  { %1410 = vmatmul.mubr.bf16.vlgmr.msra.gmra.mxu1 %v2805_v21  ;;  %1461 = vmatprep.subr.bf16.mxu0 %v2271_v30  ;;  %v141_v30 = vld [vmem:[#allocation6 + $0x198] sm:$0xff]  ;;  %v168_v3 = vld [vmem:[#allocation6 + $0x270] sm:$0xff] }
  0x8f   :  { %1501 = vmatpush1.bf16.msra.mxu1 %v2406_v29  ;;  %1532 = vmatprep.mubr.bf16.mxu1 %v2736_v0  ;;  %v208_v29 = vld [vmem:[#allocation6 + $0x3b0] sm:$0xff]  ;;  %v2295_v8 = vcombine.high %v164_v2, %v168_v3  ;;  %v281_v23 = vld [vmem:[#allocation6 + $0x5f8] sm:$0xff] }
  0x90   :  { %1502 = vmatprep.subr.bf16.mxu1 %v2399_v31  ;;  %v145_v31 = vld [vmem:[#allocation6 + $0x1b8] sm:$0xff]  ;;  %v2335_v33 = vcombine.high %v204_v28, %v208_v29  ;;  %v2334_v39 = vcombine.low %v204_v28, %v208_v29  ;;  %v156_v10 = vld [vmem:[#allocation6 + $0x210] sm:$0xff]  ;;  %v2409_v28 = vcombine.high %v277_v22, %v281_v23 }
  0x91   :  { %1462 = vmatpush1.bf16.msra.mxu0 %v2270_v35  ;;  %v2273_v34 = vcombine.high %v141_v30, %v145_v31  ;;  %v196_v35 = vld [vmem:[#allocation6 + $0x350] sm:$0xff]  ;;  %v2272_v40 = vcombine.low %v141_v30, %v145_v31  ;;  %v269_v30 = vld [vmem:[#allocation6 + $0x598] sm:$0xff] }
  0x92   :  { %1463 = vmatprep.subr.bf16.mxu0 %v2263_v37  ;;  %v133_v37 = vld [vmem:[#allocation6 + $0x158] sm:$0xff]  ;;  %v160_v11 = vld [vmem:[#allocation6 + $0x230] sm:$0xff] }
  0x93   :  { %1503 = vmatpush1.bf16.msra.mxu1 %v2398_v36  ;;  %v200_v36 = vld [vmem:[#allocation6 + $0x370] sm:$0xff]  ;;  %v2287_v19 = vcombine.high %v156_v10, %v160_v11  ;;  %v273_v31 = vld [vmem:[#allocation6 + $0x5b8] sm:$0xff] }
  0x94   :  { %1504 = vmatprep.subr.bf16.mxu1 %v2391_v38  ;;  %v137_v38 = vld [vmem:[#allocation6 + $0x178] sm:$0xff]  ;;  %v2327_v41 = vcombine.high %v196_v35, %v200_v36  ;;  %v2326_v47 = vcombine.low %v196_v35, %v200_v36  ;;  %v2401_v35 = vcombine.high %v269_v30, %v273_v31 }
  0x95   :  { %1464 = vmatpush1.bf16.msra.mxu0 %v2262_v43  ;;  %v2265_v42 = vcombine.high %v133_v37, %v137_v38  ;;  %v188_v43 = vld [vmem:[#allocation6 + $0x310] sm:$0xff]  ;;  %v2264_v48 = vcombine.low %v133_v37, %v137_v38  ;;  %v261_v37 = vld [vmem:[#allocation6 + $0x558] sm:$0xff] }
  0x96   :  { %1465 = vmatprep.subr.bf16.mxu0 %v2255_v45  ;;  %v125_v45 = vld [vmem:[#allocation6 + $0x118] sm:$0xff] }
  0x97   :  { %1505 = vmatpush1.bf16.msra.mxu1 %v2390_v44  ;;  %v192_v44 = vld [vmem:[#allocation6 + $0x330] sm:$0xff]  ;;  %v265_v38 = vld [vmem:[#allocation6 + $0x578] sm:$0xff] }
  0x98   :  { %1506 = vmatprep.subr.bf16.mxu1 %v2383_v46  ;;  %v129_v46 = vld [vmem:[#allocation6 + $0x138] sm:$0xff] }
  0x99   :  { %1466 = vmatpush1.bf16.msra.mxu0 %v2254_v51  ;;  %v2257_v49 = vcombine.high %v125_v45, %v129_v46  ;;  %v184_v51 = vld [vmem:[#allocation6 + $0x2f0] sm:$0xff]  ;;  %v2256_v55 = vcombine.low %v125_v45, %v129_v46  ;;  %v253_v45 = vld [vmem:[#allocation6 + $0x518] sm:$0xff] }
  0x9a   :  { %1467 = vmatprep.subr.bf16.mxu0 %v2247_v53  ;;  %v121_v53 = vld [vmem:[#allocation6 + $0xf8] sm:$0xff] }
  0x9b   :  { %1507 = vmatpush1.bf16.msra.mxu1 %v2382_v52  ;;  %v117_v52 = vld [vmem:[#allocation6 + $0xd8] sm:$0xff] }
  0x9c   :  { %1508 = vmatprep.subr.bf16.mxu1 %v2375_v54  ;;  %v2318_v54 = vcombine.low %v188_v43, %v192_v44  ;;  %v2249_v56 = vcombine.high %v117_v52, %v121_v53  ;;  %v257_v46 = vld [vmem:[#allocation6 + $0x538] sm:$0xff] }
  0x9d   :  { %1468 = vmatpush1.bf16.msra.mxu0 %v2246_v59  ;;  %v109_v59 = vld [vmem:[#allocation6 + $0x98] sm:$0xff] }
  0x9e   :  { %1469 = vmatprep.subr.bf16.mxu0 %v2239_v61  ;;  %v2310_v61 = vcombine.low %v180_v50, %v184_v51 }
  0x9f   :  { %1509 = vmatpush1.bf16.msra.mxu1 %v2374_v60  ;;  %v113_v60 = vld [vmem:[#allocation6 + $0xb8] sm:$0xff] }
  0xa0   :  { %1510 = vmatprep.subr.bf16.mxu1 %v2367_v62  ;;  %v2248_v62 = vcombine.low %v117_v52, %v121_v53  ;;  %v2241_v1 = vcombine.high %v109_v59, %v113_v60  ;;  %v245_v52 = vld [vmem:[#allocation6 + $0x4d8] sm:$0xff] }
  0xa1   :  { %1470 = vmatpush1.bf16.msra.mxu0 %v2238_v4  ;;  %v101_v4 = vld [vmem:[#allocation6 + $0x58] sm:$0xff] }
  0xa2   :  { %1471 = vmatprep.subr.bf16.mxu0 %v2231_v6  ;;  %v2302_v6 = vcombine.low %v172_v57, %v176_v58  ;;  %v181_v53 = vld [vmem:[#allocation6 + $0x2d8] sm:$0xff] }
  0xa3   :  { %1511 = vmatpush1.bf16.msra.mxu1 %v2366_v5  ;;  %v105_v5 = vld [vmem:[#allocation6 + $0x78] sm:$0xff] }
  0xa4   :  { %1512 = vmatprep.subr.bf16.mxu1 %v2359_v7  ;;  %v2240_v7 = vcombine.low %v109_v59, %v113_v60  ;;  %v2233_v9 = vcombine.high %v101_v4, %v105_v5  ;;  %v237_v58 = vld [vmem:[#allocation6 + $0x498] sm:$0xff] }
  0xa5   :  { %1472 = vmatpush1.bf16.msra.mxu0 %v2230_v12  ;;  %v93_v12 = vld [vmem:[#allocation6 + $0x18] sm:$0xff] }
  0xa6   :  { %1473 = vmatprep.subr.bf16.mxu0 %v2223_v15  ;;  %v2294_v15 = vcombine.low %v164_v2, %v168_v3  ;;  %v241_v59 = vld [vmem:[#allocation6 + $0x4b8] sm:$0xff] }
  0xa7   :  { %1513 = vmatpush1.bf16.msra.mxu1 %v2358_v13  ;;  %v97_v13 = vld [vmem:[#allocation6 + $0x38] sm:$0xff] }
  0xa8   :  { %1514 = vmatprep.subr.bf16.mxu1 %v2351_v16  ;;  %v2232_v16 = vcombine.low %v101_v4, %v105_v5  ;;  %v2225_v20 = vcombine.high %v93_v12, %v97_v13  ;;  %v173_v60 = vld [vmem:[#allocation6 + $0x298] sm:$0xff] }
  0xa9   :  { %1474 = vmatpush1.bf16.msra.mxu0 %v2222_v24  ;;  %v213_v24 = vld [vmem:[#allocation6 + $0x3d8] sm:$0xff] }
  0xaa   :  { %1475 = vmatprep.subr.bf16.mxu0 %v2343_v26  ;;  %v2286_v26 = vcombine.low %v156_v10, %v160_v11  ;;  %v229_v3 = vld [vmem:[#allocation6 + $0x458] sm:$0xff] }
  0xab   :  { %1515 = vmatpush1.bf16.msra.mxu1 %v2350_v25  ;;  %v217_v25 = vld [vmem:[#allocation6 + $0x3f8] sm:$0xff] }
  0xac   :  { %1541 = vmatprep.subr.bf16.mxu1 %v2281_v27  ;;  %v2224_v27 = vcombine.low %v93_v12, %v97_v13  ;;  %v2345_v29 = vcombine.high %v213_v24, %v217_v25  ;;  %v233_v4 = vld [vmem:[#allocation6 + $0x478] sm:$0xff] }
  0xad   :  { %1476 = vmatpush2.bf16.msra.mxu0 %v2342_v32  ;;  %v205_v32 = vld [vmem:[#allocation6 + $0x398] sm:$0xff] }
  0xae   :  { %1533 = vmatmul.mubr.bf16.vlgmr.msra.gmra.mxu1 %v2798_v18  ;;  %1477 = vmatprep.subr.bf16.mxu0 %v2335_v33  ;;  %v2319_v18 = vcombine.high %v188_v43, %v192_v44  ;;  %v2408_v33 = vcombine.low %v277_v22, %v281_v23  ;;  %v2393_v43 = vcombine.high %v261_v37, %v265_v38  ;;  %v165_v5 = vld [vmem:[#allocation6 + $0x258] sm:$0xff] }
  0xaf   :  { %1542 = vmatpush1.bf16.msra.mxu1 %v2280_v14  ;;  %1573 = vmatprep.mubr.bf16.mxu1 %v2796_v17  ;;  %v2311_v17 = vcombine.high %v180_v50, %v184_v51  ;;  %v209_v14 = vld [vmem:[#allocation6 + $0x3b8] sm:$0xff]  ;;  %v2385_v50 = vcombine.high %v253_v45, %v257_v46 }
  0xb0   :  { %1543 = vmatprep.subr.bf16.mxu1 %v2273_v34  ;;  %v2344_v34 = vcombine.low %v213_v24, %v217_v25  ;;  %v2337_v36 = vcombine.high %v205_v32, %v209_v14  ;;  %v221_v11 = vld [vmem:[#allocation6 + $0x418] sm:$0xff]  ;;  %v2618_v25 = vld [vmem:[#allocation2 + $0x8] ss:$0 sps:$4 sm:$0xff]  }
  0xb1   :  { %1478 = vmatpush2.bf16.msra.mxu0 %v2334_v39  ;;  %v197_v39 = vld [vmem:[#allocation6 + $0x358] sm:$0xff] }
  0xb2   :  { %1479 = vmatprep.subr.bf16.mxu0 %v2327_v41  ;;  %v2400_v41 = vcombine.low %v269_v30, %v273_v31  ;;  %v225_v12 = vld [vmem:[#allocation6 + $0x438] sm:$0xff] }
  0xb3   :  { %1544 = vmatpush1.bf16.msra.mxu1 %v2272_v40  ;;  %v201_v40 = vld [vmem:[#allocation6 + $0x378] sm:$0xff]  ;;  %v2352_v23 = vcombine.low %v221_v11, %v225_v12 }
  0xb4   :  { %1545 = vmatprep.subr.bf16.mxu1 %v2265_v42  ;;  %v2336_v42 = vcombine.low %v205_v32, %v209_v14  ;;  %v2329_v44 = vcombine.high %v197_v39, %v201_v40  ;;  %v157_v13 = vld [vmem:[#allocation6 + $0x218] sm:$0xff]  ;;  %v2500_v32 = vld [vmem:[#allocation8 + $0xc4] ss:$16 sps:$4 sm:$0xff]  }
  0xb5   :  { %1480 = vmatpush2.bf16.msra.mxu0 %v2326_v47  ;;  %v189_v47 = vld [vmem:[#allocation6 + $0x318] sm:$0xff] }
  0xb6   :  { %1481 = vmatprep.subr.bf16.mxu0 %v2319_v18  ;;  %v2392_v18 = vcombine.low %v261_v37, %v265_v38  ;;  %v2503_v14 = vld [vmem:[#allocation8 + $0xcc] ss:$16 sps:$4 sm:$0xff]   ;;  %v2507_v37 = vld [vmem:[#allocation8 + $0xa8] ss:$16 sps:$4 sm:$0xff]  }
  0xb7   :  { %1546 = vmatpush1.bf16.msra.mxu1 %v2264_v48  ;;  %v193_v48 = vld [vmem:[#allocation6 + $0x338] sm:$0xff] }
  0xb8   :  { %1547 = vmatprep.subr.bf16.mxu1 %v2257_v49  ;;  %v2328_v49 = vcombine.low %v197_v39, %v201_v40  ;;  %v2321_v51 = vcombine.high %v189_v47, %v193_v48  ;;  %v2509_v39 = vld [vmem:[#allocation8 + $0xac] ss:$16 sps:$4 sm:$0xff]   ;;  %v2512_v40 = vld [vmem:[#allocation8 + $0x84] ss:$16 sps:$4 sm:$0xff]  }
  0xb9   :  { %1482 = vmatpush2.bf16.msra.mxu0 %v2318_v54  ;;  %v185_v54 = vld [vmem:[#allocation6 + $0x2f8] sm:$0xff] }
  0xba   :  { %1483 = vmatprep.subr.bf16.mxu0 %v2311_v17  ;;  %v2320_v17 = vcombine.low %v189_v47, %v193_v48  ;;  %v2313_v57 = vcombine.high %v181_v53, %v185_v54  ;;  %v2519_v47 = vld [vmem:[#allocation8 + $0x68] ss:$16 sps:$4 sm:$0xff]   ;;  %v2524_v48 = vld [vmem:[#allocation8 + $0x44] ss:$16 sps:$4 sm:$0xff]  }
  0xbb   :  { %1548 = vmatpush1.bf16.msra.mxu1 %v2256_v55  ;;  %v2384_v55 = vcombine.low %v253_v45, %v257_v46  ;;  %v2521_v45 = vld [vmem:[#allocation8 + $0x6c] ss:$16 sps:$4 sm:$0xff]   ;;  %v2516_v46 = vld [vmem:[#allocation8 + $0x60] ss:$16 sps:$4 sm:$0xff]  }
  0xbc   :  { %1549 = vmatprep.subr.bf16.mxu1 %v2249_v56 }
  0xbd   :  { %1484 = vmatpush2.bf16.msra.mxu0 %v2310_v61  ;;  %v177_v61 = vld [vmem:[#allocation6 + $0x2b8] sm:$0xff] }
  0xbe   :  { %1485 = vmatprep.subr.bf16.mxu0 %v2303_v63  ;;  %v2312_v63 = vcombine.low %v181_v53, %v185_v54  ;;  %v2305_v2 = vcombine.high %v173_v60, %v177_v61  ;;  %v2528_v54 = vld [vmem:[#allocation8 + $0x20] ss:$16 sps:$4 sm:$0xff]  }
  0xbf   :  { %1550 = vmatpush1.bf16.msra.mxu1 %v2248_v62 }
  0xc0   :  { %1551 = vmatprep.subr.bf16.mxu1 %v2241_v1  ;;  %v2369_v1 = vcombine.high %v237_v58, %v241_v59 }
  0xc1   :  { %1486 = vmatpush2.bf16.msra.mxu0 %v2302_v6  ;;  %v169_v6 = vld [vmem:[#allocation6 + $0x278] sm:$0xff] }
  0xc2   :  { %1487 = vmatprep.subr.bf16.mxu0 %v2295_v8  ;;  %v2304_v8 = vcombine.low %v173_v60, %v177_v61  ;;  %v2297_v10 = vcombine.high %v165_v5, %v169_v6  ;;  %v2537_v60 = vld [vmem:[#allocation8 + $0x8] ss:$16 sps:$4 sm:$0xff]  }
  0xc3   :  { %1552 = vmatpush1.bf16.msra.mxu1 %v2240_v7  ;;  %v2368_v7 = vcombine.low %v237_v58, %v241_v59  ;;  %v2828_v58 = vld [vmem:[%s2881_s3] sm:$0xff]  ;;  %v2534_v59 = vld [vmem:[#allocation8] ss:$16 sps:$4 sm:$0xff]  }
  0xc4   :  { %1553 = vmatprep.subr.bf16.mxu1 %v2233_v9  ;;  %v2361_v9 = vcombine.high %v229_v3, %v233_v4 }
  0xc5   :  { %1488 = vmatpush2.bf16.msra.mxu0 %v2294_v15  ;;  %v161_v15 = vld [vmem:[#allocation6 + $0x238] sm:$0xff] }
  0xc6   :  { %1489 = vmatprep.subr.bf16.mxu0 %v2287_v19  ;;  %v2296_v19 = vcombine.low %v165_v5, %v169_v6  ;;  %v2289_v22 = vcombine.high %v157_v13, %v161_v15  ;;  %v2288_v24 = vcombine.low %v157_v13, %v161_v15  ;;  %v2543_v5 = vld [vmem:[#allocation8 + $0x1e8] ss:$16 sps:$4 sm:$0xff]   ;;  %v2546_v13 = vld [vmem:[#allocation8 + $0x1c0] ss:$16 sps:$4 sm:$0xff]  }
  0xc7   :  { %1554 = vmatpush1.bf16.msra.mxu1 %v2232_v16  ;;  %v2360_v16 = vcombine.low %v229_v3, %v233_v4  ;;  %v2540_v4 = vld [vmem:[#allocation8 + $0x1e0] ss:$16 sps:$4 sm:$0xff]   ;;  %v2549_v15 = vld [vmem:[#allocation8 + $0x1c8] ss:$16 sps:$4 sm:$0xff]  }
  0xc8   :  { %1555 = vmatprep.subr.bf16.mxu1 %v2225_v20  ;;  %v2353_v20 = vcombine.high %v221_v11, %v225_v12  ;;  %v2551_v11 = vld [vmem:[#allocation8 + $0x1cc] ss:$16 sps:$4 sm:$0xff]  }
  0xc9   :  { %1490 = vmatpush2.bf16.msra.mxu0 %v2286_v26  ;;  %v2494_v26 = vld [vmem:[#allocation8 + $0xe4] ss:$16 sps:$4 sm:$0xff]  }
  0xca   :  { %1582 = vmatprep.subr.bf16.mxu0 %v2409_v28  ;;  %v2492_v28 = vld [vmem:[#allocation8 + $0xe0] ss:$16 sps:$4 sm:$0xff]  }
  0xcb   :  { %1556 = vmatpush1.bf16.msra.mxu1 %v2224_v27  ;;  %v2497_v27 = vld [vmem:[#allocation8 + $0xec] ss:$16 sps:$4 sm:$0xff]  }
  0xcc   :  { %1557 = vmatprep.subr.bf16.mxu1 %v2345_v29  ;;  %1492 = vmatmul.mubr.bf16.vlgmr.msra.gmra.mxu0 %v2805_v21  ;;  %v2495_v29 = vld [vmem:[#allocation8 + $0xe8] ss:$16 sps:$4 sm:$0xff]  }
  0xcd   :  { %1583 = vmatpush1.bf16.msra.mxu0 %v2408_v33  ;;  %1614 = vmatprep.mubr.bf16.mxu0 %v2736_v0  ;;  %v249_v0 = vld [vmem:[#allocation6 + $0x4f8] sm:$0xff]  ;;  %v2498_v33 = vld [vmem:[#allocation8 + $0xc0] ss:$16 sps:$4 sm:$0xff]  }
  0xce   :  { %1584 = vmatprep.subr.bf16.mxu0 %v2401_v35  ;;  %v2377_v56 = vcombine.high %v245_v52, %v249_v0  ;;  %v2376_v62 = vcombine.low %v245_v52, %v249_v0  ;;  %v2530_v52 = vld [vmem:[#allocation8 + $0x24] ss:$16 sps:$4 sm:$0xff]   ;;  %v2533_v0 = vld [vmem:[#allocation8 + $0x2c] ss:$16 sps:$4 sm:$0xff]  }
  0xcf   :  { %1558 = vmatpush2.bf16.msra.mxu1 %v2344_v34  ;;  %v2501_v34 = vld [vmem:[#allocation8 + $0xc8] ss:$16 sps:$4 sm:$0xff]  }
  0xd0   :  { %1559 = vmatprep.subr.bf16.mxu1 %v2337_v36  ;;  %v2506_v36 = vld [vmem:[#allocation8 + $0xa4] ss:$16 sps:$4 sm:$0xff]  }
  0xd1   :  { %1585 = vmatpush1.bf16.msra.mxu0 %v2400_v41  ;;  %v2515_v41 = vld [vmem:[#allocation8 + $0x8c] ss:$16 sps:$4 sm:$0xff]  }
  0xd2   :  { %1586 = vmatprep.subr.bf16.mxu0 %v2393_v43  ;;  %v2513_v43 = vld [vmem:[#allocation8 + $0x88] ss:$16 sps:$4 sm:$0xff]  }
  0xd3   :  { %1560 = vmatpush2.bf16.msra.mxu1 %v2336_v42  ;;  %v2510_v42 = vld [vmem:[#allocation8 + $0x80] ss:$16 sps:$4 sm:$0xff]  }
  0xd4   :  { %1561 = vmatprep.subr.bf16.mxu1 %v2329_v44  ;;  %v2518_v44 = vld [vmem:[#allocation8 + $0x64] ss:$16 sps:$4 sm:$0xff]  }
  0xd5   :  { %1587 = vmatpush1.bf16.msra.mxu0 %v2392_v18  ;;  %v2527_v18 = vld [vmem:[#allocation8 + $0x4c] ss:$16 sps:$4 sm:$0xff]  }
  0xd6   :  { %1588 = vmatprep.subr.bf16.mxu0 %v2385_v50  ;;  %v2522_v50 = vld [vmem:[#allocation8 + $0x40] ss:$16 sps:$4 sm:$0xff]  }
  0xd7   :  { %1562 = vmatpush2.bf16.msra.mxu1 %v2328_v49  ;;  %v284_v49 = vlaneseq }
  0xd8   :  { %1563 = vmatprep.subr.bf16.mxu1 %v2321_v51  ;;  %v2525_v51 = vld [vmem:[#allocation8 + $0x48] ss:$16 sps:$4 sm:$0xff]  }
  0xd9   :  { %1589 = vmatpush1.bf16.msra.mxu0 %v2384_v55  ;;  %v2822_v53 = vshrl.u32 %v284_v49, 7  ;;  %v2531_v55 = vld [vmem:[#allocation8 + $0x28] ss:$16 sps:$4 sm:$0xff]  }
  0xda   :  { %1590 = vmatprep.subr.bf16.mxu0 %v2377_v56  ;;  %v2539_v56 = vld [vmem:[#allocation8 + $0xc] ss:$16 sps:$4 sm:$0xff]  }
  0xdb   :  { %1564 = vmatpush2.bf16.msra.mxu1 %v2320_v17  ;;  %v2536_v17 = vld [vmem:[#allocation8 + $0x4] ss:$16 sps:$4 sm:$0xff]   ;;  %v290_v61 = vsub.s32 1, %v2822_v53 }
  0xdc   :  { %1565 = vmatprep.subr.bf16.mxu1 %v2313_v57  ;;  %v286_v57 = vsub.s32 0, %v2822_v53 }
  0xdd   :  { %1591 = vmatpush1.bf16.msra.mxu0 %v2376_v62 }
  0xde   :  { %1592 = vmatprep.subr.bf16.mxu0 %v2369_v1  ;;  %v287_v62 = vrot.slane %v2828_v58, %v286_v57  ;;  %v2542_v1 = vld [vmem:[#allocation8 + $0x1e4] ss:$16 sps:$4 sm:$0xff]  }
  0xdf   :  { %1566 = vmatpush2.bf16.msra.mxu1 %v2312_v63  ;;  %v291_v63 = vrot.slane %v2828_v58, %v290_v61 }
  0xe0   :  { %1567 = vmatprep.subr.bf16.mxu1 %v2305_v2  ;;  %v2545_v2 = vld [vmem:[#allocation8 + $0x1ec] ss:$16 sps:$4 sm:$0xff]  }
  0xe1   :  { %1593 = vmatpush1.bf16.msra.mxu0 %v2368_v7 }
  0xe2   :  { %1594 = vmatprep.subr.bf16.mxu0 %v2361_v9 }
  0xe3   :  { %1568 = vmatpush2.bf16.msra.mxu1 %v2304_v8 }
  0xe4   :  { %1569 = vmatprep.subr.bf16.mxu1 %v2297_v10  ;;  %v2548_v10 = vld [vmem:[#allocation8 + $0x1c4] ss:$16 sps:$4 sm:$0xff]  }
  0xe5   :  { %1595 = vmatpush1.bf16.msra.mxu0 %v2360_v16 }
  0xe6   :  { %1596 = vmatprep.subr.bf16.mxu0 %v2353_v20  ;;  %v2554_v20 = vld [vmem:[#allocation8 + $0x1a4] ss:$16 sps:$4 sm:$0xff]  }
  0xe7   :  { %1570 = vmatpush2.bf16.msra.mxu1 %v2296_v19 }
  0xe8   :  { %1571 = vmatprep.subr.bf16.mxu1 %v2289_v22  ;;  %v2557_v22 = vld [vmem:[#allocation8 + $0x1ac] ss:$16 sps:$4 sm:$0xff]  }
  0xe9   :  { %1597 = vmatpush1.bf16.msra.mxu0 %v2352_v23  ;;  %v2552_v23 = vld [vmem:[#allocation8 + $0x1a0] ss:$16 sps:$4 sm:$0xff]  }
  0xea   :  { %2071 = vmatprep.subr.bf16.mxu0 %v2494_v26  ;;  %v2563_v26 = vld [vmem:[#allocation8 + $0x18c] ss:$16 sps:$4 sm:$0xff]  }
  0xeb   :  { %1572 = vmatpush2.bf16.msra.mxu1 %v2288_v24  ;;  %v2555_v24 = vld [vmem:[#allocation8 + $0x1a8] ss:$16 sps:$4 sm:$0xff]  }
  0xec   :  { %1615 = vmatmul.mubr.bf16.vlgmr.msra.gmra.mxu0 %v2618_v25  ;;  %2112 = vmatprep.subr.bf16.mxu1 %v2497_v27  ;;  %v2560_v25 = vld [vmem:[#allocation8 + $0x184] ss:$16 sps:$4 sm:$0xff]   ;;  %v2558_v27 = vld [vmem:[#allocation8 + $0x180] ss:$16 sps:$4 sm:$0xff]  }
  0xed   :  { %2072 = vmatpush1.bf16.msra.mxu0 %v2492_v28  ;;  %v2561_v28 = vld [vmem:[#allocation8 + $0x188] ss:$16 sps:$4 sm:$0xff]  }
  0xee   :  { %1574 = vmatmul.mubr.bf16.vlgmr.msra.gmra.mxu1 %v2805_v21  ;;  %2073 = vmatprep.subr.bf16.mxu0 %v2500_v32  ;;  %v2504_v21 = vld [vmem:[#allocation8 + $0xa0] ss:$16 sps:$4 sm:$0xff]   ;;  %v2567_v32 = vld [vmem:[#allocation8 + $0x168] ss:$16 sps:$4 sm:$0xff]  }
  0xef   :  { %2113 = vmatpush1.bf16.msra.mxu1 %v2495_v29  ;;  %v2566_v29 = vld [vmem:[#allocation8 + $0x164] ss:$16 sps:$4 sm:$0xff]  }
  0xf0   :  { %2114 = vmatprep.subr.bf16.mxu1 %v2503_v14  ;;  %v2572_v14 = vld [vmem:[#allocation8 + $0x144] ss:$16 sps:$4 sm:$0xff]  }
  0xf1   :  { %2074 = vmatpush1.bf16.msra.mxu0 %v2498_v33  ;;  %v2575_v33 = vld [vmem:[#allocation8 + $0x14c] ss:$16 sps:$4 sm:$0xff]  }
  0xf2   :  { %2075 = vmatprep.subr.bf16.mxu0 %v2506_v36  ;;  %v2581_v36 = vld [vmem:[#allocation8 + $0x12c] ss:$16 sps:$4 sm:$0xff]  }
  0xf3   :  { %2115 = vmatpush1.bf16.msra.mxu1 %v2501_v34  ;;  %v2570_v34 = vld [vmem:[#allocation8 + $0x140] ss:$16 sps:$4 sm:$0xff]  }
  0xf4   :  { %2116 = vmatprep.subr.bf16.mxu1 %v2509_v39  ;;  %v2584_v39 = vld [vmem:[#allocation8 + $0x104] ss:$16 sps:$4 sm:$0xff]  }
  0xf5   :  { %2076 = vmatpush1.bf16.msra.mxu0 %v2504_v21  ;;  %v2578_v21 = vld [vmem:[#allocation8 + $0x124] ss:$16 sps:$4 sm:$0xff]  }
  0xf6   :  { %2077 = vmatprep.subr.bf16.mxu0 %v2512_v40  ;;  %v2587_v40 = vld [vmem:[#allocation8 + $0x10c] ss:$16 sps:$4 sm:$0xff]  }
  0xf7   :  { %2117 = vmatpush1.bf16.msra.mxu1 %v2507_v37  ;;  %v2576_v37 = vld [vmem:[#allocation8 + $0x120] ss:$16 sps:$4 sm:$0xff]  }
  0xf8   :  { %2118 = vmatprep.subr.bf16.mxu1 %v2515_v41  ;;  %v294_v41 = vsub.s32 2, %v2822_v53 }
  0xf9   :  { %2078 = vmatpush1.bf16.msra.mxu0 %v2510_v42  ;;  %v2582_v42 = vld [vmem:[#allocation8 + $0x100] ss:$16 sps:$4 sm:$0xff]  }
  0xfa   :  { %2079 = vmatprep.subr.bf16.mxu0 %v2518_v44  ;;  %v298_v44 = vsub.s32 3, %v2822_v53 }
  0xfb   :  { %2119 = vmatpush1.bf16.msra.mxu1 %v2513_v43  ;;  %v2585_v43 = vld [vmem:[#allocation8 + $0x108] ss:$16 sps:$4 sm:$0xff]  }
  0xfc   :  { %2120 = vmatprep.subr.bf16.mxu1 %v2521_v45  ;;  %v295_v45 = vrot.slane %v2828_v58, %v294_v41 }
  0xfd   :  { %2080 = vmatpush1.bf16.msra.mxu0 %v2516_v46 }
  0xfe   :  { %2081 = vmatprep.subr.bf16.mxu0 %v2524_v48 }
  0xff   :  { %2121 = vmatpush1.bf16.msra.mxu1 %v2519_v47  ;;  %v299_v47 = vrot.slane %v2828_v58, %v298_v44 }
 0x100   :  { %2122 = vmatprep.subr.bf16.mxu1 %v2527_v18 }
 0x101   :  { %2082 = vmatpush1.bf16.msra.mxu0 %v2522_v50 }
 0x102   :  { %2083 = vmatprep.subr.bf16.mxu0 %v2530_v52 }
 0x103   :  { %2123 = vmatpush1.bf16.msra.mxu1 %v2525_v51 }
 0x104   :  { %2124 = vmatprep.subr.bf16.mxu1 %v2533_v0 }
 0x105   :  { %2084 = vmatpush1.bf16.msra.mxu0 %v2528_v54 }
 0x106   :  { %2085 = vmatprep.subr.bf16.mxu0 %v2536_v17 }
 0x107   :  { %2125 = vmatpush1.bf16.msra.mxu1 %v2531_v55 }
 0x108   :  { %2126 = vmatprep.subr.bf16.mxu1 %v2539_v56 }
 0x109   :  { %2086 = vmatpush1.bf16.msra.mxu0 %v2534_v59 }
 0x10a   :  { %2087 = vmatprep.subr.bf16.mxu0 %v2542_v1 }
 0x10b   :  { %2127 = vmatpush1.bf16.msra.mxu1 %v2537_v60 }
 0x10c   :  { %2128 = vmatprep.subr.bf16.mxu1 %v2545_v2 }
 0x10d   :  { %2088 = vmatpush2.bf16.msra.mxu0 %v2540_v4 }
 0x10e   :  { %v2818_v30 = vpop.f32.mrf.mxu1  ;;  %2089 = vmatprep.subr.bf16.mxu0 %v2548_v10 }
 0x10f   :  { %2129 = vmatpush2.bf16.msra.mxu1 %v2543_v5 }
 0x110   :  { %v2820_v31 = vpop.f32.mrf.mxu1  ;;  %2130 = vmatprep.subr.bf16.mxu1 %v2551_v11 }
 0x111   :  { %2090 = vmatpush2.bf16.msra.mxu0 %v2546_v13 }
 0x112   :  { %v1374_v35 = vpop.f32.mrf.mxu1  ;;  %2091 = vmatprep.subr.bf16.mxu0 %v2554_v20 }
 0x113   :  { %2131 = vmatpush2.bf16.msra.mxu1 %v2549_v15  ;;  %v2573_v35 = vld [vmem:[#allocation8 + $0x148] ss:$16 sps:$4 sm:$0xff]   ;;  %v310_v15 = vsub.s32 6, %v2822_v53 }
 0x114   :  { %v1375_v38 = vpop.f32.mrf.mxu1  ;;  %2132 = vmatprep.subr.bf16.mxu1 %v2557_v22 }
 0x115   :  { %2092 = vmatpush2.bf16.msra.mxu0 %v2552_v23  ;;  %v2579_v38 = vld [vmem:[#allocation8 + $0x128] ss:$16 sps:$4 sm:$0xff]   ;;  %v311_v22 = vrot.slane %v2828_v58, %v310_v15 }
 0x116   :  { %2093 = vmatprep.subr.bf16.mxu0 %v2560_v25 }
 0x117   :  { %2133 = vmatpush2.bf16.msra.mxu1 %v2555_v24 }
 0x118   :  { %2134 = vmatprep.subr.bf16.mxu1 %v2563_v26 }
 0x119   :  { %2094 = vmatpush2.bf16.msra.mxu0 %v2558_v27 }
 0x11a   :  { %2095 = vmatprep.subr.bf16.mxu0 %v2566_v29 }
 0x11b   :  { %2135 = vmatpush2.bf16.msra.mxu1 %v2561_v28 }
 0x12c   :  { %v1329_v3 = vpop.f32.mrf.mxu0 }
 0x12d   :  { %v1330_v6 = vadd.f32 %v1329_v3, %v287_v62 }
 0x12e   :  { %v1331_v7 = vpop.f32.mrf.mxu0 }
 0x12f   :  { %v2838_v8 = vadd.f32 %v2818_v30, %v1330_v6  ;;  %v1332_v9 = vadd.f32 %v1331_v7, %v291_v63  ;;  %v2569_v30 = vld [vmem:[#allocation8 + $0x16c] ss:$16 sps:$4 sm:$0xff]  }
 0x130   :  { %v1333_v12 = vpop.f32.mrf.mxu0  ;;  %2136 = vmatprep.subr.bf16.mxu1 %v2569_v30 }
 0x131   :  { %v2841_v16 = vadd.f32 %v2820_v31, %v1332_v9  ;;  %v2564_v31 = vld [vmem:[#allocation8 + $0x160] ss:$16 sps:$4 sm:$0xff]   ;;  %2137 = vmatpush2.bf16.msra.mxu1 %v2567_v32  ;;  %v2410_v1 = vmul.f32 -1.442695, %v2838_v8  ;;  %v302_v8 = vsub.s32 4, %v2822_v53 }
 0x132   :  { %v1334_v19 = vpop.f32.mrf.mxu0  ;;  %2096 = vmatpush2.bf16.msra.mxu0 %v2564_v31  ;;  %2138 = vmatprep.subr.bf16.mxu1 %v2575_v33 }
 0x133   :  { %2097 = vmatprep.subr.bf16.mxu0 %v2572_v14  ;;  %v2411_v3 = vmul.f32 -1.442695, %v2841_v16  ;;  %2588 = vpow2.f32 %v2410_v1  ;;  %v306_v16 = vsub.s32 5, %v2822_v53  ;;  %v314_v19 = vsub.s32 7, %v2822_v53 }
 0x134   :  { %v303_v20 = vrot.slane %v2828_v58, %v302_v8 }
 0x135   :  { %2139 = vmatpush2.bf16.msra.mxu1 %v2573_v35  ;;  %2590 = vpow2.f32 %v2411_v3  ;;  %v307_v24 = vrot.slane %v2828_v58, %v306_v16  ;;  %v315_v26 = vrot.slane %v2828_v58, %v314_v19 }
 0x136   :  { %2098 = vmatpush2.bf16.msra.mxu0 %v2570_v34  ;;  %2140 = vmatprep.subr.bf16.mxu1 %v2581_v36 }
 0x137   :  { %2099 = vmatprep.subr.bf16.mxu0 %v2578_v21 }
 0x139   :  { %2141 = vmatpush2.bf16.msra.mxu1 %v2579_v38 }
 0x13a   :  { %2100 = vmatpush2.bf16.msra.mxu0 %v2576_v37  ;;  %2142 = vmatprep.subr.bf16.mxu1 %v2587_v40 }
 0x13b   :  { %2101 = vmatprep.subr.bf16.mxu0 %v2584_v39 }
 0x13d   :  { %2143 = vmatpush2.bf16.msra.mxu1 %v2585_v43 }
 0x13e   :  { %2102 = vmatpush2.bf16.msra.mxu0 %v2582_v42 }
 0x140   :  { %v2589_v10 = vpop.eup %2588 }
 0x141   :  { %v1629_v12 = vadd.f32 1.0, %v2589_v10 }
 0x142   :  { %v2591_v11 = vpop.eup %2590 }
 0x143   :  { %v1630_v13 = vadd.f32 1.0, %v2591_v11 }
 0x14c   :  { %v1452_v46 = vpop.f32.mrf.mxu0 }
 0x14e   :  { %v1411_v48 = vpop.f32.mrf.mxu1  ;;  %v1454_v49 = vpop.f32.mrf.mxu0 }
 0x14f   :  { %v1412_v18 = vadd.f32 %v1411_v48, %v295_v45 }
 0x150   :  { %v1413_v50 = vpop.f32.mrf.mxu1  ;;  %v1456_v0 = vpop.f32.mrf.mxu0 }
 0x151   :  { %v1453_v51 = vadd.f32 %v1452_v46, %v1412_v18  ;;  %v1414_v52 = vadd.f32 %v1413_v50, %v299_v47 }
 0x152   :  { %v1415_v54 = vpop.f32.mrf.mxu1  ;;  %v1457_v17 = vpop.f32.mrf.mxu0 }
 0x153   :  { %v1455_v55 = vadd.f32 %v1454_v49, %v1414_v52  ;;  %v2412_v7 = vmul.f32 -1.442695, %v1453_v51 }
 0x154   :  { %v1416_v56 = vpop.f32.mrf.mxu1 }
 0x155   :  { %v2413_v9 = vmul.f32 -1.442695, %v1455_v55  ;;  %2592 = vpow2.f32 %v2412_v7  ;;  %v2619_v55 = vld [vmem:[#allocation3] sm:$0xff] }
 0x157   :  { %2594 = vpow2.f32 %v2413_v9 }
 0x158   :  { %2596 = vrcp.f32 %v1629_v12 }
 0x159   :  { %2598 = vrcp.f32 %v1630_v13 }
 0x162   :  { %v2593_v23 = vpop.eup %2592 }
 0x163   :  { %v1641_v29 = vadd.f32 1.0, %v2593_v23 }
 0x164   :  { %v2595_v27 = vpop.eup %2594 }
 0x165   :  { %v1642_v33 = vadd.f32 1.0, %v2595_v27  ;;  %v2597_v37 = vpop.eup %2596  ;;  %2600 = vrcp.f32 %v1641_v29 }
 0x166   :  { %v2599_v58 = vpop.eup %2598 }
 0x167   :  { %2602 = vrcp.f32 %v1642_v33 }
 0x16e   :  { %v1534_v59 = vpop.f32.mrf.mxu1 }
 0x170   :  { %v1536_v60 = vpop.f32.mrf.mxu1 }
 0x172   :  { %v1538_v62 = vpop.f32.mrf.mxu1  ;;  %v2601_v49 = vpop.eup %2600 }
 0x173   :  { %v1653_v51 = vsub.f32 1.0, %v2601_v49  ;;  %v1657_v17 = vmul.f32 %v2619_v55, %v2601_v49  ;;  %v2620_v62 = vld [vmem:[#allocation3 + $0x8] sm:$0xff] }
 0x174   :  { %v1539_v63 = vpop.f32.mrf.mxu1  ;;  %v2603_v50 = vpop.eup %2602 }
 0x175   :  { %v1654_v0 = vsub.f32 1.0, %v2603_v50  ;;  %v1658_v63 = vmul.f32 %v2620_v62, %v2603_v50 }
 0x18c   :  { %v1493_v2 = vpop.f32.mrf.mxu0 }
 0x18d   :  { %v1494_v30 = vadd.f32 %v1493_v2, %v303_v20 }
 0x18e   :  { %v1495_v4 = vpop.f32.mrf.mxu0 }
 0x18f   :  { %v1496_v34 = vadd.f32 %v1495_v4, %v307_v24  ;;  %v1535_v39 = vadd.f32 %v1534_v59, %v1494_v30  ;;  %v1729_v4 = vld [vmem:[%s2883_s5] sm:$0xf]  ;;  %s2737_s5 = smov [#allocation10]  }
 0x190   :  { %v1497_v5 = vpop.f32.mrf.mxu0  ;;  %v1738_v7 = vrot.slane %v1729_v4, %v290_v61  ;;  %v1746_v9 = vrot.slane %v1729_v4, %v298_v44  ;;  %s2200_s21 = sshll.u32 %s2737_s5, 4  ;;  %s2201_s21 = int_to_ptr.vmem [resolvable:$true] %s2200_s21 }
 0x191   :  { %v1537_v46 = vadd.f32 %v1536_v60, %v1496_v34  ;;  %v1734_v5 = vrot.slane %v1729_v4, %v286_v57  ;;  %s2681_s22 = scalar_lea.vmem %s2201_s21, 256  ;;  %p2686_p2 = scmp.lt.s32.totalorder %s2201_s21, %s2201_s21 }
 0x192   :  { %v1498_v6 = vpop.f32.mrf.mxu0  ;;  %p2682_p1 = scmp.ne.s32.totalorder %s2201_s21, %s2681_s22  ;;  %p2687_p3 = scmp.lt.s32.totalorder %s2681_s22, %s2681_s22 }
 0x193   :  { %v1742_v6 = vrot.slane %v1729_v4, %v294_v41 }
 0x194   :  { %p2688_p4 = por %p2687_p3, %p2686_p2 }
 0x196   :  { %p2689_p5 = pnand %p2688_p4, %p2682_p1 }
 0x1ac   :  { %v1616_v25 = vpop.f32.mrf.mxu0 }
 0x1ae   :  { %v1575_v28 = vpop.f32.mrf.mxu1  ;;  %v1618_v32 = vpop.f32.mrf.mxu0 }
 0x1af   :  { %v1576_v31 = vadd.f32 %v1575_v28, %v311_v22 }
 0x1b0   :  { %v1577_v14 = vpop.f32.mrf.mxu1  ;;  %v1620_v36 = vpop.f32.mrf.mxu0 }
 0x1b1   :  { %v1617_v35 = vadd.f32 %v1616_v25, %v1576_v31  ;;  %v1578_v21 = vadd.f32 %v1577_v14, %v315_v26 }
 0x1b2   :  { %v1579_v38 = vpop.f32.mrf.mxu1  ;;  %v1621_v43 = vpop.f32.mrf.mxu0 }
 0x1b3   :  { %v1647_v40 = vmul.f32 %v2597_v37, %v1617_v35  ;;  %v1619_v42 = vadd.f32 %v1618_v32, %v1578_v21 }
 0x1b4   :  { %v1580_v45 = vpop.f32.mrf.mxu1 }
 0x1b5   :  { %v1649_v47 = vadd.f32 %v1647_v40, %v1535_v39  ;;  %v1648_v48 = vmul.f32 %v2599_v58, %v1619_v42 }
 0x1b7   :  { %2604 = vtanh.f32 %v1649_v47  ;;  %v1650_v18 = vadd.f32 %v1648_v48, %v1537_v46 }
 0x1b9   :  { %2606 = vtanh.f32 %v1650_v18 }
 0x1c4   :  { %v2605_v52 = vpop.eup %2604 }
 0x1c5   :  { %v1655_v54 = vmul.f32 %v2605_v52, %v1653_v51 }
 0x1c6   :  { %v2607_v56 = vpop.eup %2606 }
 0x1c7   :  { %v1656_v59 = vmul.f32 %v2607_v56, %v1654_v0  ;;  %v1659_v1 = vadd.f32 %v1657_v17, %v1655_v54 }
 0x1c9   :  { %v1660_v2 = vadd.f32 %v1658_v63, %v1656_v59  ;;  %1661 = vst [vmem:[#allocation10] sm:$0xff] %v1659_v1  ;;  %v1663_v3 = vpack.c.bf16 %v1659_v1, %v1659_v1 }
 0x1cb   :  { %v1664_v60 = vpack.c.bf16 %v1660_v2, %v1660_v2  ;;  %1662 = vst [vmem:[#allocation10 + $0x8] sm:$0xff] %v1660_v2 }
 0x1cd   :  { %2103 = vmatprep.mubr.bf16.mxu0 %v1664_v60  ;;  %2144 = vmatprep.mubr.bf16.mxu1 %v1664_v60 }
 0x1ce   :  { %2104 = vmatmul.mubr.bf16.vlgmr.msra.gmra.mxu0 %v1663_v3  ;;  %2145 = vmatmul.mubr.bf16.vlgmr.msra.gmra.mxu1 %v1663_v3 }
 0x28e   :  { %v2105_v10 = vpop.f32.mrf.mxu0  ;;  %v2146_v11 = vpop.f32.mrf.mxu1 }
 0x28f   :  { %v2106_v8 = vadd.f32 %v2105_v10, %v1734_v5  ;;  %v2147_v15 = vadd.f32 %v2146_v11, %v1742_v6 }
 0x290   :  { %v2107_v12 = vpop.f32.mrf.mxu0  ;;  %v2148_v13 = vpop.f32.mrf.mxu1 }
 0x291   :  { %v2108_v16 = vadd.f32 %v2107_v12, %v1738_v7  ;;  %v2149_v19 = vadd.f32 %v2148_v13, %v1746_v9 }
 0x292   :  { %v2109_v20 = vpop.f32.mrf.mxu0  ;;  %v2150_v22 = vpop.f32.mrf.mxu1 }
 0x293   :  { %v2153_v57 = vmax.f32 %v2106_v8, %v2108_v16  ;;  %v2154_v23 = vmax.f32 %v2147_v15, %v2149_v19 }
 0x294   :  { %v2110_v24 = vpop.f32.mrf.mxu0  ;;  %v2151_v41 = vpop.f32.mrf.mxu1 }
 0x295   :  { %v2155_v25 = vmax.f32 %v2153_v57, %v2154_v23 }
 0x297   :  { %2156 = vmax.xlane.f32.xlu0 %v2155_v25 }
 0x320   :  { %v2157_v61 = vpop.xlane.xlu0 %2156 }
 0x321   :  { %v2158_v26 = vsub.f32 %v2106_v8, %v2157_v61  ;;  %v2159_v53 = vsub.f32 %v2108_v16, %v2157_v61  ;;  %v2160_v44 = vsub.f32 %v2147_v15, %v2157_v61  ;;  %v2161_v27 = vsub.f32 %v2149_v19, %v2157_v61 }
 0x323   :  { %v2162_v28 = vmul.f32 1.442695, %v2158_v26  ;;  %v2164_v29 = vmul.f32 1.442695, %v2159_v53  ;;  %v2166_v30 = vmul.f32 1.442695, %v2160_v44 }
 0x324   :  { %v2168_v31 = vmul.f32 1.442695, %v2161_v27 }
 0x325   :  { %2608 = vpow2.f32 %v2162_v28 }
 0x326   :  { %2610 = vpow2.f32 %v2164_v29 }
 0x327   :  { %2612 = vpow2.f32 %v2166_v30 }
 0x328   :  { %2614 = vpow2.f32 %v2168_v31 }
 0x332   :  { %v2609_v32 = vpop.eup %2608 }
 0x333   :  { %v2611_v14 = vpop.eup %2610 }
 0x334   :  { %v2170_v33 = vadd.f32 %v2611_v14, %v2609_v32  ;;  %v2613_v34 = vpop.eup %2612 }
 0x335   :  { %v2615_v21 = vpop.eup %2614 }
 0x336   :  { %v2171_v35 = vadd.f32 %v2613_v34, %v2170_v33 }
 0x338   :  { %v2172_v36 = vadd.f32 %v2615_v21, %v2171_v35 }
 0x33a   :  { %2173 = vadd.xlane.f32.xlu0 %v2172_v36 }
 0x33b   :  { %2692 = shalt.err (!%p2689_p5)
}
 0x33c   :  { %2203 = dma.vmem_to_hbm [thread:$0]  %s2201_s21, 256, %s2885_s7, [#allocation11]  }
 0x33d   :  { %s2738_s25 = smov [#allocation9]  }
 0x33e   :  { %s2190_s26 = sshll.u32 %s2738_s25, 4  ;;  %s2191_s26 = int_to_ptr.vmem [resolvable:$true] %s2190_s26 }
 0x33f   :  { %s2701_s27 = scalar_lea.vmem %s2191_s26, 512  ;;  %p2706_p7 = scmp.lt.s32.totalorder %s2191_s26, %s2191_s26 }
 0x340   :  { %p2702_p6 = scmp.ne.s32.totalorder %s2191_s26, %s2701_s27  ;;  %p2707_p8 = scmp.lt.s32.totalorder %s2701_s27, %s2701_s27 }
 0x342   :  { %p2708_p9 = por %p2707_p8, %p2706_p7 }
 0x344   :  { %p2709_p10 = pnand %p2708_p9, %p2702_p6 }
 0x3c3   :  { %v2174_v37 = vpop.xlane.xlu0 %2173 }
 0x3c4   :  { %2616 = vrcp.f32 %v2174_v37 }
 0x3d1   :  { %v2617_v38 = vpop.eup %2616 }
 0x3d2   :  { %v2176_v39 = vmul.f32 %v2617_v38, %v2609_v32  ;;  %v2177_v40 = vmul.f32 %v2617_v38, %v2611_v14  ;;  %v2178_v42 = vmul.f32 %v2617_v38, %v2613_v34  ;;  %v2179_v43 = vmul.f32 %v2617_v38, %v2615_v21 }
 0x3d4   :  { %2180 = vst [vmem:[#allocation9] sm:$0xff] %v2176_v39  ;;  %2181 = vst [vmem:[#allocation9 + $0x8] sm:$0xff] %v2177_v40 }
 0x3d5   :  { %2182 = vst [vmem:[#allocation9 + $0x10] sm:$0xff] %v2178_v42  ;;  %2183 = vst [vmem:[#allocation9 + $0x18] sm:$0xff] %v2179_v43 }
 0x3d6   :  { %2712 = shalt.err (!%p2709_p10)
}
 0x3d7   :  { %2193 = dma.vmem_to_hbm [thread:$0]  %s2191_s26, 512, %s2884_s6, [#allocation5]  }
 0x3d8   :  { %2725 = dma.done.wait [#allocation5], 512  }
 0x3d9   :  { %2726 = vsyncadd [#allocation5], 4294966784 }
 0x3da   :  { %2727 = dma.done.wait [#allocation11], 256  }
 0x3db   :  { %2728 = vsyncadd [#allocation11], 4294967040 }
 0x3dc   :  { %2210 = vsyncpa [#allocation4], 1 }
 0x3dd   :  { %2211 = vsyncpa [#allocation7], 1 }
 0x3de   :  { %2212 = vsyncpa [#allocation5], 1 }
 0x3df   :  { %2213 = vsyncpa [#allocation11], 1 }

</bundles_post_ra>
